<compile_context>
chip_gen: v6e
topology: v6e:2x2x1
jax: 0.10.0
libtpu: 0.0.40
codegen_flags: <defaults>
</compile_context>

<pallas_src>
import math

import jax
import jax.numpy as jnp
from jax.experimental import pallas as pl
from jax.experimental.pallas import tpu as pltpu

# ----------------------------- hyper-parameters ------------------------------
TEMP = 0.2          # self.T
FEAT_DIM = 128      # feat_dim (real DenseCL width -> lane-dense D)
QUEUE_LEN = 512     # queue_len (small synthetic; production 65536)
BACKBONE_C = 32     # synthetic backbone channels (TODO(synk): pad to 128 for prod)
HID = 64            # neck hidden width
KT_MAX = 256        # K-tile width; kept small so the synthetic config exercises
                    # >1 K tile.  Production: 2048-4096.


def _l2_normalize(x, axis):
    n = jnp.sqrt(jnp.sum(x * x, axis=axis, keepdims=True))
    return x / jnp.maximum(n, 1e-12)


# ================================ Pallas kernel ===============================
# grid = (K // Kt,), "arbitrary" (online-LSE state carried in scratch).
#   inputs : g_q,g_k (N,D) bf16, queue/queue2 (D,K) bf16 [tiled (D,Kt)],
#            f_q (N,HW,Cb) f32, f_k (N,Cb,HW) f32,
#            d_q (N,HW,D) bf16, d_k (N,D,HW) bf16, pix_idx (N,HW,1) i32
#   outputs: l_pos (N,1) f32, l_neg (N,K) f32 [tiled (N,Kt)], loss (1,1) f32
def _densecl_kernel(gq_ref, gk_ref, queue_ref, fq_ref, fk_ref, dq_ref, dk_ref,
                    pixidx_ref, queue2_ref,
                    lpos_ref, lneg_ref, loss_ref,
                    dqf_sc, pos_pix_sc, pos_dense_sc, lposg_sc,
                    m_d_sc, s_d_sc, m_g_sc, s_g_sc):
    inv_t = 1.0 / TEMP
    ktile_idx = pl.program_id(0)
    n_img, hw, dfeat = dq_ref.shape
    rows = n_img * hw

    # ------------------- step 0: positives + LSE-state init -------------------
    @pl.when(ktile_idx == 0)
    def _init():
        # global InfoNCE positive: <g_q, g_k> / T per image
        gq32 = gq_ref[...].astype(jnp.float32)
        gk32 = gk_ref[...].astype(jnp.float32)
        lposg_sc[...] = jnp.sum(gq32 * gk32, axis=1, keepdims=True) * inv_t

        # online-LSE accumulators
        m_d_sc[...] = jnp.full_like(m_d_sc, -jnp.inf)
        s_d_sc[...] = jnp.zeros_like(s_d_sc)
        m_g_sc[...] = jnp.full_like(m_g_sc, -jnp.inf)
        s_g_sc[...] = jnp.zeros_like(s_g_sc)

        # per-image dense / pixcontrast positives.  Key tensors are already
        # (C, HW) so the matmul RHS needs no in-kernel transpose.
        iota = jax.lax.broadcasted_iota(jnp.int32, (hw, hw), 1)
        for n in range(n_img):                 # static unroll; step-0-only work
            r0 = n * hw
            sim = jnp.dot(fq_ref[n], fk_ref[n],
                          preferred_element_type=jnp.float32)        # (hw, hw)
            smax = jnp.max(sim, axis=1, keepdims=True)
            dense_idx = jnp.min(jnp.where(sim == smax, iota, hw),
                                axis=1, keepdims=True)               # first max
            dense_onehot = (iota == dense_idx).astype(jnp.float32)
            pix_onehot = (iota == pixidx_ref[n]).astype(jnp.float32)

            sd = jnp.dot(dq_ref[n], dk_ref[n],
                         preferred_element_type=jnp.float32)         # (hw, hw)
            pos_pix_sc[r0:r0 + hw, :] = (
                jnp.sum(sd * pix_onehot, axis=1, keepdims=True) * inv_t)
            pos_dense_sc[r0:r0 + hw, :] = (
                jnp.sum(sd * dense_onehot, axis=1, keepdims=True) * inv_t)
            # flatten d_q once into (rows, D) scratch; reused every K tile
            dqf_sc[r0:r0 + hw, :] = dq_ref[n]

    # -------------------- every step: one K tile of negatives -----------------
    # global negatives: stream the (N, Kt) tile straight to the output
    # (lane-dense Kt-wide store) and update the global online-LSE state.
    lng = jnp.dot(gq_ref[...], queue_ref[...],
                  preferred_element_type=jnp.float32) * inv_t         # (N, Kt)
    lneg_ref[...] = lng
    mg_new = jnp.maximum(m_g_sc[...], jnp.max(lng, axis=1, keepdims=True))
    s_g_sc[...] = (s_g_sc[...] * jnp.exp(m_g_sc[...] - mg_new)
                   + jnp.sum(jnp.exp(lng - mg_new), axis=1, keepdims=True))
    m_g_sc[...] = mg_new

    # dense negatives: (rows, Kt) tile vs queue2; shared by pix + dense losses.
    neg = jnp.dot(dqf_sc[...], queue2_ref[...],
                  preferred_element_type=jnp.float32) * inv_t         # (rows,Kt)
    md_new = jnp.maximum(m_d_sc[...], jnp.max(neg, axis=1, keepdims=True))
    s_d_sc[...] = (s_d_sc[...] * jnp.exp(m_d_sc[...] - md_new)
                   + jnp.sum(jnp.exp(neg - md_new), axis=1, keepdims=True))
    m_d_sc[...] = md_new

    # ----------------------------- last step: finalize ------------------------
    @pl.when(ktile_idx == pl.num_programs(0) - 1)
    def _finalize():
        def ce_mean(pos, m, s, denom):
            # label-0 cross entropy: LSE([pos, negs]) - pos, averaged over rows
            mm = jnp.maximum(pos, m)
            lse = mm + jnp.log(jnp.exp(pos - mm) + s * jnp.exp(m - mm))
            return jnp.sum(lse - pos, axis=0, keepdims=True) * (1.0 / denom)

        loss_g = ce_mean(lposg_sc[...], m_g_sc[...], s_g_sc[...], n_img)
        loss_pix = ce_mean(pos_pix_sc[...], m_d_sc[...], s_d_sc[...], rows)
        loss_dense = ce_mean(pos_dense_sc[...], m_d_sc[...], s_d_sc[...], rows)
        loss_ref[...] = (loss_g + loss_dense + loss_pix) * (1.0 / 3.0)
        lpos_ref[...] = lposg_sc[...]


def _vmem_limit_bytes(est_bytes):
    try:
        cap = int(pltpu.get_tpu_info().vmem_capacity_bytes)
    except Exception:
        cap = 64 * 1024 * 1024            # v7x per-TensorCore VMEM (smallest)
    return int(min(max(est_bytes, 16 * 1024 * 1024), int(0.75 * cap)))


def _densecl_call(g_q, g_k, queue, f_q, f_k, d_q, d_k, pix_idx, queue2):
    n_img, dfeat = g_q.shape
    k_len = queue.shape[1]
    hw = d_q.shape[1]
    cb = f_q.shape[2]
    rows = n_img * hw

    ktile = k_len if k_len <= KT_MAX else KT_MAX
    assert k_len % ktile == 0 and (ktile == k_len or ktile % 128 == 0)
    num_ktiles = k_len // ktile

    # rough VMEM footprint (double-buffered operand tiles + scratch) + headroom
    est = 2 * (2 * n_img * dfeat * 2              # g_q, g_k (bf16)
               + 2 * dfeat * ktile * 2            # queue / queue2 tiles (bf16)
               + 2 * n_img * hw * cb * 4          # f_q, f_k (f32)
               + 2 * n_img * hw * dfeat * 2       # d_q, d_k (bf16)
               + n_img * hw * 4                   # pix_idx
               + n_img * ktile * 4 + n_img * 4 + 4)      # outputs
    est += rows * dfeat * 2 + 4 * rows * 4 + 3 * n_img * 4   # scratch
    vmem_limit = _vmem_limit_bytes(est + (8 << 20))

    grid_spec = pltpu.PrefetchScalarGridSpec(
        num_scalar_prefetch=0,
        grid=(num_ktiles,),
        in_specs=[
            pl.BlockSpec((n_img, dfeat), lambda k: (0, 0)),         # g_q
            pl.BlockSpec((n_img, dfeat), lambda k: (0, 0)),         # g_k
            pl.BlockSpec((dfeat, ktile), lambda k: (0, k)),         # queue
            pl.BlockSpec((n_img, hw, cb), lambda k: (0, 0, 0)),     # f_q
            pl.BlockSpec((n_img, cb, hw), lambda k: (0, 0, 0)),     # f_k
            pl.BlockSpec((n_img, hw, dfeat), lambda k: (0, 0, 0)),  # d_q
            pl.BlockSpec((n_img, dfeat, hw), lambda k: (0, 0, 0)),  # d_k
            pl.BlockSpec((n_img, hw, 1), lambda k: (0, 0, 0)),      # pix_idx
            # TODO(synk): sweep pipeline_mode=pl.Buffered(3) here on v5e at
            # production K.
            pl.BlockSpec((dfeat, ktile), lambda k: (0, k)),         # queue2
        ],
        out_specs=[
            pl.BlockSpec((n_img, 1), lambda k: (0, 0)),             # l_pos
            pl.BlockSpec((n_img, ktile), lambda k: (0, k)),         # l_neg
            pl.BlockSpec((1, 1), lambda k: (0, 0)),                 # loss
        ],
        scratch_shapes=[
            pltpu.VMEM((rows, dfeat), jnp.bfloat16),   # d_q flattened (rows, D)
            pltpu.VMEM((rows, 1), jnp.float32),        # pos_pix
            pltpu.VMEM((rows, 1), jnp.float32),        # pos_dense
            pltpu.VMEM((n_img, 1), jnp.float32),       # l_pos (global)
            pltpu.VMEM((rows, 1), jnp.float32),        # m (dense LSE)
            pltpu.VMEM((rows, 1), jnp.float32),        # s (dense LSE)
            pltpu.VMEM((n_img, 1), jnp.float32),       # m (global LSE)
            pltpu.VMEM((n_img, 1), jnp.float32),       # s (global LSE)
        ],
    )
    return pl.pallas_call(
        _densecl_kernel,
        grid_spec=grid_spec,
        out_shape=(
            jax.ShapeDtypeStruct((n_img, 1), jnp.float32),       # l_pos (global)
            jax.ShapeDtypeStruct((n_img, k_len), jnp.float32),   # l_neg (global)
            jax.ShapeDtypeStruct((1, 1), jnp.float32),           # combined loss
        ),
        compiler_params=pltpu.CompilerParams(
            # K axis carries online-LSE scratch -> "arbitrary".
            # TODO(synk): add a leading "parallel" batch/row-tile axis so v7x's
            # two TensorCores split production-size work.
            dimension_semantics=("arbitrary",),
            vmem_limit_bytes=vmem_limit),
    )(g_q, g_k, queue, f_q, f_k, d_q, d_k, pix_idx, queue2)


# ============================ glue: backbone / neck ===========================
def init_params(key):
    ks = jax.random.split(key, 8)
    p = {
        "conv_w": 0.1 * jax.random.normal(ks[0], (BACKBONE_C, 3, 4, 4), jnp.float32),
        "conv_b": 0.1 * jax.random.normal(ks[1], (BACKBONE_C,), jnp.float32),
        "mlp_w1": 0.1 * jax.random.normal(ks[2], (BACKBONE_C, HID), jnp.float32),
        "mlp_b1": jnp.zeros((HID,), jnp.float32),
        "mlp_w2": 0.1 * jax.random.normal(ks[3], (HID, FEAT_DIM), jnp.float32),
        "mlp_b2": jnp.zeros((FEAT_DIM,), jnp.float32),
        "mlp2_w1": 0.1 * jax.random.normal(ks[4], (BACKBONE_C, HID), jnp.float32),
        "mlp2_b1": jnp.zeros((HID,), jnp.float32),
        "mlp2_w2": 0.1 * jax.random.normal(ks[5], (HID, FEAT_DIM), jnp.float32),
        "mlp2_b2": jnp.zeros((FEAT_DIM,), jnp.float32),
        "queue": _l2_normalize(
            jax.random.normal(ks[6], (FEAT_DIM, QUEUE_LEN), jnp.float32), axis=0),
        "queue2": _l2_normalize(
            jax.random.normal(ks[7], (FEAT_DIM, QUEUE_LEN), jnp.float32), axis=0),
    }
    return p


def _backbone(p, im):
    """Synthetic backbone: 4x4/s4 conv + ReLU -> (N, Cb, H, W)."""
    f = jax.lax.conv_general_dilated(
        im, p["conv_w"], window_strides=(4, 4), padding="VALID",
        dimension_numbers=("NCHW", "OIHW", "NCHW"))
    return jax.nn.relu(f + p["conv_b"].reshape(1, -1, 1, 1))


def _global_proj(p, f):
    pooled = jnp.mean(f, axis=(2, 3))                              # (N, Cb)
    return (jax.nn.relu(pooled @ p["mlp_w1"] + p["mlp_b1"])
            @ p["mlp_w2"] + p["mlp_b2"])                           # (N, D)


def _encoder_q(p, im):
    """Query branch: per-pixel tensors in (N, HW, C) — the matmul LHS layout."""
    f = _backbone(p, im)
    n, c, h, w = f.shape
    g = _global_proj(p, f)
    fp = f.reshape(n, c, h * w).transpose(0, 2, 1)                 # (N, HW, Cb)
    d = (jax.nn.relu(fp @ p["mlp2_w1"] + p["mlp2_b1"])
         @ p["mlp2_w2"] + p["mlp2_b2"])                            # (N, HW, D)
    return fp, g, d, (h, w)


def _encoder_k(p, im):
    """Key branch: per-pixel tensors kept channels-first, (N, C, HW).

    This is the matmul-RHS layout the kernel wants, so there is no transpose
    anywhere on the key side (neither wrapper-side nor in-kernel XLU).
    """
    f = _backbone(p, im)
    n, c, h, w = f.shape
    g = _global_proj(p, f)
    fp = f.reshape(n, c, h * w)                                    # (N, Cb, HW)
    hid = jax.nn.relu(jnp.einsum("ch,ncp->nhp", p["mlp2_w1"], fp)
                      + p["mlp2_b1"][None, :, None])
    d = (jnp.einsum("hd,nhp->ndp", p["mlp2_w2"], hid)
         + p["mlp2_b2"][None, :, None])                            # (N, D, HW)
    k2 = jnp.mean(d, axis=2)                                       # (N, D)
    return fp, g, d, k2, (h, w)


# ================================ forward =====================================
@jax.jit
def densecl_pixcontrast_forward(p, im_q, im_k, c_q, c_k):
    # ----- query encoder -----
    f_q, g_q, d_q, (h, w) = _encoder_q(p, im_q)
    n = f_q.shape[0]
    hw = h * w
    f_q = _l2_normalize(f_q, axis=2)          # per-pixel over channels
    g_q = _l2_normalize(g_q, axis=1)
    d_q = _l2_normalize(d_q, axis=2)

    # ----- key encoder: at init encoder_k == encoder_q, and the momentum EMA
    # of identical params is the identity, so the same params are reused.
    # TODO(synk): DDP concat_all_gather / batch shuffle-unshuffle are identity
    # at world_size=1 with a BN-free backbone; omitted.
    f_k, g_k, d_k, k2, _ = _encoder_k(p, im_k)
    f_k = _l2_normalize(f_k, axis=1)          # channel axis in (N, Cb, HW)
    g_k = _l2_normalize(g_k, axis=1)
    d_k = _l2_normalize(d_k, axis=1)
    k2 = _l2_normalize(k2, axis=1)

    # ----- crop-grid geometry (no_grad glue) -> pixcontrast nearest-key index.
    # argmin(sqrt(dx^2+dy^2)/max_diag) == argmin(dx^2+dy^2): sqrt and the diag
    # divide are monotone, so they are dropped (identical indices).
    x_array = jnp.broadcast_to(
        jnp.arange(w, dtype=c_q.dtype).reshape(1, 1, w), (1, h, w))
    y_array = jnp.broadcast_to(
        jnp.arange(h, dtype=c_q.dtype).reshape(1, h, 1), (1, h, w))
    q_bw = ((c_q[:, 2] - c_q[:, 0]) / w).reshape(-1, 1, 1)
    q_bh = ((c_q[:, 3] - c_q[:, 1]) / h).reshape(-1, 1, 1)
    k_bw = ((c_k[:, 2] - c_k[:, 0]) / w).reshape(-1, 1, 1)
    k_bh = ((c_k[:, 3] - c_k[:, 1]) / h).reshape(-1, 1, 1)
    center_q_x = (x_array + 0.5) * q_bw + c_q[:, 0].reshape(-1, 1, 1)   # (N,H,W)
    center_q_y = (y_array + 0.5) * q_bh + c_q[:, 1].reshape(-1, 1, 1)
    center_k_x = (x_array + 0.5) * k_bw + c_k[:, 0].reshape(-1, 1, 1)
    center_k_y = (y_array + 0.5) * k_bh + c_k[:, 1].reshape(-1, 1, 1)
    dx = center_q_x.reshape(n, hw, 1) - center_k_x.reshape(n, 1, hw)
    dy = center_q_y.reshape(n, hw, 1) - center_k_y.reshape(n, 1, hw)
    pix_idx = jnp.argmin(dx * dx + dy * dy, axis=2).astype(jnp.int32)   # (N, HW)
    pix_idx = pix_idx.reshape(n, hw, 1)

    # ----- fused Pallas kernel: global + dense + pixcontrast InfoNCE -----
    # matmul operands in bf16 (half DMA, 2x MXU rate); f_q/f_k stay f32 so the
    # dense argmax tie-breaking matches an f32 reference; LSE math is f32.
    # TODO(synk): at production K, quantize queue/queue2 to fp8 (v7x) /
    # int8 (v5e, v6e) and emit l_neg in bf16 to cut HBM traffic further.
    bf16 = lambda x: x.astype(jnp.bfloat16)
    l_pos, l_neg, loss = _densecl_call(
        bf16(g_q), bf16(g_k), bf16(p["queue"]),
        f_q, f_k, bf16(d_q), bf16(d_k), pix_idx, bf16(p["queue2"]))

    logits = jnp.concatenate([l_pos, l_neg], axis=1)        # (N, K+1), wrapper
    labels = jnp.zeros((n,), dtype=jnp.int32)
    extra = {"logits": logits, "labels": labels}

    # TODO(synk): queue/queue2 dequeue-and-enqueue (g_k, k2) buffer mutation omitted.
    del g_k, k2
    return loss[0, 0], extra


# ================================= main =======================================
if __name__ == "__main__":
    key = jax.random.PRNGKey(0)
    k_par, k_iq, k_ik, k_cq1, k_cq2, k_ck1, k_ck2 = jax.random.split(key, 7)

    params = init_params(k_par)

    N = 2
    im_q = jax.random.normal(k_iq, (N, 3, 16, 16), jnp.float32)
    im_k = jax.random.normal(k_ik, (N, 3, 16, 16), jnp.float32)

    # crop boxes [x0, y0, x1, y1] with x1 > x0, y1 > y0
    base_q = jax.random.uniform(k_cq1, (N, 2), jnp.float32, 0.0, 50.0)
    wh_q = jax.random.uniform(k_cq2, (N, 2), jnp.float32, 20.0, 80.0)
    c_q = jnp.concatenate([base_q, base_q + wh_q], axis=1)
    base_k = jax.random.uniform(k_ck1, (N, 2), jnp.float32, 0.0, 50.0)
    wh_k = jax.random.uniform(k_ck2, (N, 2), jnp.float32, 20.0, 80.0)
    c_k = jnp.concatenate([base_k, base_k + wh_k], axis=1)

    loss, extra = densecl_pixcontrast_forward(params, im_q, im_k, c_q, c_k)
    loss = jax.block_until_ready(loss)
    jax.block_until_ready(extra["logits"])

    assert loss.shape == () and bool(jnp.isfinite(loss))
    assert extra["logits"].shape == (N, QUEUE_LEN + 1)
    print("KERNEL_OK")
</pallas_src>

<mosaic_0001>
module attributes {stable_mosaic.version = 11 : i64} {
  func.func @_densecl_kernel(%arg0: i32, %arg1: memref<2x128xbf16, #tpu.memory_space<vmem>>, %arg2: memref<2x128xbf16, #tpu.memory_space<vmem>>, %arg3: memref<128x256xbf16, #tpu.memory_space<vmem>>, %arg4: memref<2x16x32xf32, #tpu.memory_space<vmem>>, %arg5: memref<2x32x16xf32, #tpu.memory_space<vmem>>, %arg6: memref<2x16x128xbf16, #tpu.memory_space<vmem>>, %arg7: memref<2x128x16xbf16, #tpu.memory_space<vmem>>, %arg8: memref<2x16x1xi32, #tpu.memory_space<vmem>>, %arg9: memref<128x256xbf16, #tpu.memory_space<vmem>>, %arg10: memref<2x1xf32, #tpu.memory_space<vmem>>, %arg11: memref<2x256xf32, #tpu.memory_space<vmem>>, %arg12: memref<1x1xf32, #tpu.memory_space<vmem>>, %arg13: memref<32x128xbf16, #tpu.memory_space<vmem>>, %arg14: memref<32x1xf32, #tpu.memory_space<vmem>>, %arg15: memref<32x1xf32, #tpu.memory_space<vmem>>, %arg16: memref<2x1xf32, #tpu.memory_space<vmem>>, %arg17: memref<32x1xf32, #tpu.memory_space<vmem>>, %arg18: memref<32x1xf32, #tpu.memory_space<vmem>>, %arg19: memref<2x1xf32, #tpu.memory_space<vmem>>, %arg20: memref<2x1xf32, #tpu.memory_space<vmem>>) attributes {dimension_semantics = [#tpu.dimension_semantics<arbitrary>], iteration_bounds = array<i64: 2>, scalar_prefetch = 0 : i64, scratch_operands = 8 : i64, tpu.core_type = #tpu.core_type<tc>, window_params = [{pipeline_mode = #tpu.pipeline_mode<synchronous>, transform_indices = @transform_0, window_bounds = array<i64: 2, 128>}, {pipeline_mode = #tpu.pipeline_mode<synchronous>, transform_indices = @transform_1, window_bounds = array<i64: 2, 128>}, {transform_indices = @transform_2, window_bounds = array<i64: 128, 256>}, {pipeline_mode = #tpu.pipeline_mode<synchronous>, transform_indices = @transform_3, window_bounds = array<i64: 2, 16, 32>}, {pipeline_mode = #tpu.pipeline_mode<synchronous>, transform_indices = @transform_4, window_bounds = array<i64: 2, 32, 16>}, {pipeline_mode = #tpu.pipeline_mode<synchronous>, transform_indices = @transform_5, window_bounds = array<i64: 2, 16, 128>}, {pipeline_mode = #tpu.pipeline_mode<synchronous>, transform_indices = @transform_6, window_bounds = array<i64: 2, 128, 16>}, {pipeline_mode = #tpu.pipeline_mode<synchronous>, transform_indices = @transform_7, window_bounds = array<i64: 2, 16, 1>}, {transform_indices = @transform_8, window_bounds = array<i64: 128, 256>}, {pipeline_mode = #tpu.pipeline_mode<synchronous>, transform_indices = @transform_9, window_bounds = array<i64: 2, 1>}, {transform_indices = @transform_10, window_bounds = array<i64: 2, 256>}, {pipeline_mode = #tpu.pipeline_mode<synchronous>, transform_indices = @transform_11, window_bounds = array<i64: 1, 1>}]} {
    %c0_i32 = arith.constant 0 : i32
    %0 = arith.cmpi eq, %arg0, %c0_i32 : i32
    %1 = arith.extui %0 : i1 to i32
    %c0_i32_0 = arith.constant 0 : i32
    %2 = arith.cmpi ne, %1, %c0_i32_0 : i32
    scf.if %2 {
      %c0_38 = arith.constant 0 : index
      %c0_39 = arith.constant 0 : index
      %51 = vector.load %arg1[%c0_38, %c0_39] : memref<2x128xbf16, #tpu.memory_space<vmem>>, vector<2x128xbf16>
      %52 = arith.extf %51 : vector<2x128xbf16> to vector<2x128xf32>
      %c0_40 = arith.constant 0 : index
      %c0_41 = arith.constant 0 : index
      %53 = vector.load %arg2[%c0_40, %c0_41] : memref<2x128xbf16, #tpu.memory_space<vmem>>, vector<2x128xbf16>
      %54 = arith.extf %53 : vector<2x128xbf16> to vector<2x128xf32>
      %55 = arith.mulf %52, %54 : vector<2x128xf32>
      %cst_42 = arith.constant dense<0.000000e+00> : vector<2xf32>
      %56 = vector.multi_reduction <add>, %55, %cst_42 [1] : vector<2x128xf32> to vector<2xf32>
      %57 = vector.shape_cast %56 : vector<2xf32> to vector<2x1xf32>
      %cst_43 = arith.constant 5.000000e+00 : f32
      %58 = vector.broadcast %cst_43 : f32 to vector<2x1xf32>
      %59 = arith.mulf %57, %58 : vector<2x1xf32>
      %c0_44 = arith.constant 0 : index
      %c0_45 = arith.constant 0 : index
      %60 = vector.load %arg16[%c0_44, %c0_45] : memref<2x1xf32, #tpu.memory_space<vmem>>, vector<2x1xf32>
      tpu.vector_store %arg16[%c0_44, %c0_45], %59 {strides = array<i32>} : memref<2x1xf32, #tpu.memory_space<vmem>>, vector<2x1xf32>,
      %cst_46 = arith.constant 0xFF800000 : f32
      %61 = vector.broadcast %cst_46 : f32 to vector<32x1xf32>
      %c0_47 = arith.constant 0 : index
      %c0_48 = arith.constant 0 : index
      %62 = vector.load %arg17[%c0_47, %c0_48] : memref<32x1xf32, #tpu.memory_space<vmem>>, vector<32x1xf32>
      tpu.vector_store %arg17[%c0_47, %c0_48], %61 {strides = array<i32>} : memref<32x1xf32, #tpu.memory_space<vmem>>, vector<32x1xf32>,
      %cst_49 = arith.constant 0.000000e+00 : f32
      %63 = vector.broadcast %cst_49 : f32 to vector<32x1xf32>
      %c0_50 = arith.constant 0 : index
      %c0_51 = arith.constant 0 : index
      %64 = vector.load %arg18[%c0_50, %c0_51] : memref<32x1xf32, #tpu.memory_space<vmem>>, vector<32x1xf32>
      tpu.vector_store %arg18[%c0_50, %c0_51], %63 {strides = array<i32>} : memref<32x1xf32, #tpu.memory_space<vmem>>, vector<32x1xf32>,
      %cst_52 = arith.constant 0xFF800000 : f32
      %65 = vector.broadcast %cst_52 : f32 to vector<2x1xf32>
      %c0_53 = arith.constant 0 : index
      %c0_54 = arith.constant 0 : index
      %66 = vector.load %arg19[%c0_53, %c0_54] : memref<2x1xf32, #tpu.memory_space<vmem>>, vector<2x1xf32>
      tpu.vector_store %arg19[%c0_53, %c0_54], %65 {strides = array<i32>} : memref<2x1xf32, #tpu.memory_space<vmem>>, vector<2x1xf32>,
      %cst_55 = arith.constant 0.000000e+00 : f32
      %67 = vector.broadcast %cst_55 : f32 to vector<2x1xf32>
      %c0_56 = arith.constant 0 : index
      %c0_57 = arith.constant 0 : index
      %68 = vector.load %arg20[%c0_56, %c0_57] : memref<2x1xf32, #tpu.memory_space<vmem>>, vector<2x1xf32>
      tpu.vector_store %arg20[%c0_56, %c0_57], %67 {strides = array<i32>} : memref<2x1xf32, #tpu.memory_space<vmem>>, vector<2x1xf32>,
      %69 = tpu.iota {dimensions = array<i32: 1>} : vector<16x16xi32>
      %c0_58 = arith.constant 0 : index
      %c0_59 = arith.constant 0 : index
      %c0_60 = arith.constant 0 : index
      %70 = vector.load %arg4[%c0_58, %c0_59, %c0_60] : memref<2x16x32xf32, #tpu.memory_space<vmem>>, vector<1x16x32xf32>
      %71 = vector.shape_cast %70 : vector<1x16x32xf32> to vector<16x32xf32>
      %c0_61 = arith.constant 0 : index
      %c0_62 = arith.constant 0 : index
      %c0_63 = arith.constant 0 : index
      %72 = vector.load %arg5[%c0_61, %c0_62, %c0_63] : memref<2x32x16xf32, #tpu.memory_space<vmem>>, vector<1x32x16xf32>
      %73 = vector.shape_cast %72 : vector<1x32x16xf32> to vector<32x16xf32>
      %cst_64 = arith.constant dense<0.000000e+00> : vector<16x16xf32>
      %74 = tpu.matmul %71, %73, %cst_64 {dimension_numbers = #tpu.dot_dimension_numbers<[1], [0], [0], [1], [0, 0, 1, 1], [], []>} : vector<16x32xf32>, vector<32x16xf32>, vector<16x16xf32> -> vector<16x16xf32>
      %cst_65 = arith.constant dense<0xFF800000> : vector<16xf32>
      %75 = vector.multi_reduction <maximumf>, %74, %cst_65 [1] : vector<16x16xf32> to vector<16xf32>
      %76 = vector.shape_cast %75 : vector<16xf32> to vector<16x1xf32>
      %77 = vector.broadcast %76 : vector<16x1xf32> to vector<16x16xf32>
      %78 = arith.cmpf oeq, %74, %77 : vector<16x16xf32>
      %c16_i32 = arith.constant 16 : i32
      %79 = vector.broadcast %c16_i32 : i32 to vector<16x16xi32>
      %80 = arith.select %78, %69, %79 : vector<16x16xi1>, vector<16x16xi32>
      %cst_66 = arith.constant dense<2147483647> : vector<16xi32>
      %81 = vector.multi_reduction <minsi>, %80, %cst_66 [1] : vector<16x16xi32> to vector<16xi32>
      %82 = vector.shape_cast %81 : vector<16xi32> to vector<16x1xi32>
      %83 = vector.broadcast %82 : vector<16x1xi32> to vector<16x16xi32>
      %84 = arith.cmpi eq, %69, %83 : vector<16x16xi32>
      %85 = arith.extui %84 : vector<16x16xi1> to vector<16x16xi32>
      %86 = arith.sitofp %85 : vector<16x16xi32> to vector<16x16xf32>
      %c0_67 = arith.constant 0 : index
      %c0_68 = arith.constant 0 : index
      %c0_69 = arith.constant 0 : index
      %87 = vector.load %arg8[%c0_67, %c0_68, %c0_69] : memref<2x16x1xi32, #tpu.memory_space<vmem>>, vector<1x16x1xi32>
      %88 = vector.shape_cast %87 : vector<1x16x1xi32> to vector<16x1xi32>
      %89 = vector.broadcast %88 : vector<16x1xi32> to vector<16x16xi32>
      %90 = arith.cmpi eq, %69, %89 : vector<16x16xi32>
      %91 = arith.extui %90 : vector<16x16xi1> to vector<16x16xi32>
      %92 = arith.sitofp %91 : vector<16x16xi32> to vector<16x16xf32>
      %c0_70 = arith.constant 0 : index
      %c0_71 = arith.constant 0 : index
      %c0_72 = arith.constant 0 : index
      %93 = vector.load %arg6[%c0_70, %c0_71, %c0_72] : memref<2x16x128xbf16, #tpu.memory_space<vmem>>, vector<1x16x128xbf16>
      %94 = vector.shape_cast %93 : vector<1x16x128xbf16> to vector<16x128xbf16>
      %c0_73 = arith.constant 0 : index
      %c0_74 = arith.constant 0 : index
      %c0_75 = arith.constant 0 : index
      %95 = vector.load %arg7[%c0_73, %c0_74, %c0_75] : memref<2x128x16xbf16, #tpu.memory_space<vmem>>, vector<1x128x16xbf16>
      %96 = vector.shape_cast %95 : vector<1x128x16xbf16> to vector<128x16xbf16>
      %cst_76 = arith.constant dense<0.000000e+00> : vector<16x16xf32>
      %97 = tpu.matmul %94, %96, %cst_76 {dimension_numbers = #tpu.dot_dimension_numbers<[1], [0], [0], [1], [0, 0, 1, 1], [], []>} : vector<16x128xbf16>, vector<128x16xbf16>, vector<16x16xf32> -> vector<16x16xf32>
      %98 = arith.mulf %97, %92 : vector<16x16xf32>
      %cst_77 = arith.constant dense<0.000000e+00> : vector<16xf32>
      %99 = vector.multi_reduction <add>, %98, %cst_77 [1] : vector<16x16xf32> to vector<16xf32>
      %100 = vector.shape_cast %99 : vector<16xf32> to vector<16x1xf32>
      %cst_78 = arith.constant 5.000000e+00 : f32
      %101 = vector.broadcast %cst_78 : f32 to vector<16x1xf32>
      %102 = arith.mulf %100, %101 : vector<16x1xf32>
      %c0_79 = arith.constant 0 : index
      %c0_80 = arith.constant 0 : index
      %103 = vector.load %arg14[%c0_79, %c0_80] : memref<32x1xf32, #tpu.memory_space<vmem>>, vector<16x1xf32>
      tpu.vector_store %arg14[%c0_79, %c0_80], %102 {strides = array<i32>} : memref<32x1xf32, #tpu.memory_space<vmem>>, vector<16x1xf32>,
      %104 = arith.mulf %97, %86 : vector<16x16xf32>
      %cst_81 = arith.constant dense<0.000000e+00> : vector<16xf32>
      %105 = vector.multi_reduction <add>, %104, %cst_81 [1] : vector<16x16xf32> to vector<16xf32>
      %106 = vector.shape_cast %105 : vector<16xf32> to vector<16x1xf32>
      %cst_82 = arith.constant 5.000000e+00 : f32
      %107 = vector.broadcast %cst_82 : f32 to vector<16x1xf32>
      %108 = arith.mulf %106, %107 : vector<16x1xf32>
      %c0_83 = arith.constant 0 : index
      %c0_84 = arith.constant 0 : index
      %109 = vector.load %arg15[%c0_83, %c0_84] : memref<32x1xf32, #tpu.memory_space<vmem>>, vector<16x1xf32>
      tpu.vector_store %arg15[%c0_83, %c0_84], %108 {strides = array<i32>} : memref<32x1xf32, #tpu.memory_space<vmem>>, vector<16x1xf32>,
      %c0_85 = arith.constant 0 : index
      %c0_86 = arith.constant 0 : index
      %c0_87 = arith.constant 0 : index
      %110 = vector.load %arg6[%c0_85, %c0_86, %c0_87] : memref<2x16x128xbf16, #tpu.memory_space<vmem>>, vector<1x16x128xbf16>
      %111 = vector.shape_cast %110 : vector<1x16x128xbf16> to vector<16x128xbf16>
      %c0_88 = arith.constant 0 : index
      %c0_89 = arith.constant 0 : index
      %112 = vector.load %arg13[%c0_88, %c0_89] : memref<32x128xbf16, #tpu.memory_space<vmem>>, vector<16x128xbf16>
      tpu.vector_store %arg13[%c0_88, %c0_89], %111 {strides = array<i32>} : memref<32x128xbf16, #tpu.memory_space<vmem>>, vector<16x128xbf16>,
      %c1 = arith.constant 1 : index
      %c0_90 = arith.constant 0 : index
      %c0_91 = arith.constant 0 : index
      %113 = vector.load %arg4[%c1, %c0_90, %c0_91] : memref<2x16x32xf32, #tpu.memory_space<vmem>>, vector<1x16x32xf32>
      %114 = vector.shape_cast %113 : vector<1x16x32xf32> to vector<16x32xf32>
      %c1_92 = arith.constant 1 : index
      %c0_93 = arith.constant 0 : index
      %c0_94 = arith.constant 0 : index
      %115 = vector.load %arg5[%c1_92, %c0_93, %c0_94] : memref<2x32x16xf32, #tpu.memory_space<vmem>>, vector<1x32x16xf32>
      %116 = vector.shape_cast %115 : vector<1x32x16xf32> to vector<32x16xf32>
      %cst_95 = arith.constant dense<0.000000e+00> : vector<16x16xf32>
      %117 = tpu.matmul %114, %116, %cst_95 {dimension_numbers = #tpu.dot_dimension_numbers<[1], [0], [0], [1], [0, 0, 1, 1], [], []>} : vector<16x32xf32>, vector<32x16xf32>, vector<16x16xf32> -> vector<16x16xf32>
      %cst_96 = arith.constant dense<0xFF800000> : vector<16xf32>
      %118 = vector.multi_reduction <maximumf>, %117, %cst_96 [1] : vector<16x16xf32> to vector<16xf32>
      %119 = vector.shape_cast %118 : vector<16xf32> to vector<16x1xf32>
      %120 = vector.broadcast %119 : vector<16x1xf32> to vector<16x16xf32>
      %121 = arith.cmpf oeq, %117, %120 : vector<16x16xf32>
      %c16_i32_97 = arith.constant 16 : i32
      %122 = vector.broadcast %c16_i32_97 : i32 to vector<16x16xi32>
      %123 = arith.select %121, %69, %122 : vector<16x16xi1>, vector<16x16xi32>
      %cst_98 = arith.constant dense<2147483647> : vector<16xi32>
      %124 = vector.multi_reduction <minsi>, %123, %cst_98 [1] : vector<16x16xi32> to vector<16xi32>
      %125 = vector.shape_cast %124 : vector<16xi32> to vector<16x1xi32>
      %126 = vector.broadcast %125 : vector<16x1xi32> to vector<16x16xi32>
      %127 = arith.cmpi eq, %69, %126 : vector<16x16xi32>
      %128 = arith.extui %127 : vector<16x16xi1> to vector<16x16xi32>
      %129 = arith.sitofp %128 : vector<16x16xi32> to vector<16x16xf32>
      %c1_99 = arith.constant 1 : index
      %c0_100 = arith.constant 0 : index
      %c0_101 = arith.constant 0 : index
      %130 = vector.load %arg8[%c1_99, %c0_100, %c0_101] : memref<2x16x1xi32, #tpu.memory_space<vmem>>, vector<1x16x1xi32>
      %131 = vector.shape_cast %130 : vector<1x16x1xi32> to vector<16x1xi32>
      %132 = vector.broadcast %131 : vector<16x1xi32> to vector<16x16xi32>
      %133 = arith.cmpi eq, %69, %132 : vector<16x16xi32>
      %134 = arith.extui %133 : vector<16x16xi1> to vector<16x16xi32>
      %135 = arith.sitofp %134 : vector<16x16xi32> to vector<16x16xf32>
      %c1_102 = arith.constant 1 : index
      %c0_103 = arith.constant 0 : index
      %c0_104 = arith.constant 0 : index
      %136 = vector.load %arg6[%c1_102, %c0_103, %c0_104] : memref<2x16x128xbf16, #tpu.memory_space<vmem>>, vector<1x16x128xbf16>
      %137 = vector.shape_cast %136 : vector<1x16x128xbf16> to vector<16x128xbf16>
      %c1_105 = arith.constant 1 : index
      %c0_106 = arith.constant 0 : index
      %c0_107 = arith.constant 0 : index
      %138 = vector.load %arg7[%c1_105, %c0_106, %c0_107] : memref<2x128x16xbf16, #tpu.memory_space<vmem>>, vector<1x128x16xbf16>
      %139 = vector.shape_cast %138 : vector<1x128x16xbf16> to vector<128x16xbf16>
      %cst_108 = arith.constant dense<0.000000e+00> : vector<16x16xf32>
      %140 = tpu.matmul %137, %139, %cst_108 {dimension_numbers = #tpu.dot_dimension_numbers<[1], [0], [0], [1], [0, 0, 1, 1], [], []>} : vector<16x128xbf16>, vector<128x16xbf16>, vector<16x16xf32> -> vector<16x16xf32>
      %141 = arith.mulf %140, %135 : vector<16x16xf32>
      %cst_109 = arith.constant dense<0.000000e+00> : vector<16xf32>
      %142 = vector.multi_reduction <add>, %141, %cst_109 [1] : vector<16x16xf32> to vector<16xf32>
      %143 = vector.shape_cast %142 : vector<16xf32> to vector<16x1xf32>
      %cst_110 = arith.constant 5.000000e+00 : f32
      %144 = vector.broadcast %cst_110 : f32 to vector<16x1xf32>
      %145 = arith.mulf %143, %144 : vector<16x1xf32>
      %c16 = arith.constant 16 : index
      %c0_111 = arith.constant 0 : index
      %146 = vector.load %arg14[%c16, %c0_111] : memref<32x1xf32, #tpu.memory_space<vmem>>, vector<16x1xf32>
      tpu.vector_store %arg14[%c16, %c0_111], %145 {strides = array<i32>} : memref<32x1xf32, #tpu.memory_space<vmem>>, vector<16x1xf32>,
      %147 = arith.mulf %140, %129 : vector<16x16xf32>
      %cst_112 = arith.constant dense<0.000000e+00> : vector<16xf32>
      %148 = vector.multi_reduction <add>, %147, %cst_112 [1] : vector<16x16xf32> to vector<16xf32>
      %149 = vector.shape_cast %148 : vector<16xf32> to vector<16x1xf32>
      %cst_113 = arith.constant 5.000000e+00 : f32
      %150 = vector.broadcast %cst_113 : f32 to vector<16x1xf32>
      %151 = arith.mulf %149, %150 : vector<16x1xf32>
      %c16_114 = arith.constant 16 : index
      %c0_115 = arith.constant 0 : index
      %152 = vector.load %arg15[%c16_114, %c0_115] : memref<32x1xf32, #tpu.memory_space<vmem>>, vector<16x1xf32>
      tpu.vector_store %arg15[%c16_114, %c0_115], %151 {strides = array<i32>} : memref<32x1xf32, #tpu.memory_space<vmem>>, vector<16x1xf32>,
      %c1_116 = arith.constant 1 : index
      %c0_117 = arith.constant 0 : index
      %c0_118 = arith.constant 0 : index
      %153 = vector.load %arg6[%c1_116, %c0_117, %c0_118] : memref<2x16x128xbf16, #tpu.memory_space<vmem>>, vector<1x16x128xbf16>
      %154 = vector.shape_cast %153 : vector<1x16x128xbf16> to vector<16x128xbf16>
      %c16_119 = arith.constant 16 : index
      %c0_120 = arith.constant 0 : index
      %155 = vector.load %arg13[%c16_119, %c0_120] : memref<32x128xbf16, #tpu.memory_space<vmem>>, vector<16x128xbf16>
      tpu.vector_store %arg13[%c16_119, %c0_120], %154 {strides = array<i32>} : memref<32x128xbf16, #tpu.memory_space<vmem>>, vector<16x128xbf16>,
    } else {
    }
    %c0 = arith.constant 0 : index
    %c0_1 = arith.constant 0 : index
    %3 = vector.load %arg1[%c0, %c0_1] : memref<2x128xbf16, #tpu.memory_space<vmem>>, vector<2x128xbf16>
    %c0_2 = arith.constant 0 : index
    %c0_3 = arith.constant 0 : index
    %4 = vector.load %arg3[%c0_2, %c0_3] : memref<128x256xbf16, #tpu.memory_space<vmem>>, vector<128x256xbf16>
    %cst = arith.constant dense<0.000000e+00> : vector<2x256xf32>
    %5 = tpu.matmul %3, %4, %cst {dimension_numbers = #tpu.dot_dimension_numbers<[1], [0], [0], [1], [0, 0, 1, 1], [], []>} : vector<2x128xbf16>, vector<128x256xbf16>, vector<2x256xf32> -> vector<2x256xf32>
    %cst_4 = arith.constant 5.000000e+00 : f32
    %6 = vector.broadcast %cst_4 : f32 to vector<2x256xf32>
    %7 = arith.mulf %5, %6 : vector<2x256xf32>
    %c0_5 = arith.constant 0 : index
    %c0_6 = arith.constant 0 : index
    %8 = vector.load %arg11[%c0_5, %c0_6] : memref<2x256xf32, #tpu.memory_space<vmem>>, vector<2x256xf32>
    tpu.vector_store %arg11[%c0_5, %c0_6], %7 {strides = array<i32>} : memref<2x256xf32, #tpu.memory_space<vmem>>, vector<2x256xf32>,
    %c0_7 = arith.constant 0 : index
    %c0_8 = arith.constant 0 : index
    %9 = vector.load %arg19[%c0_7, %c0_8] : memref<2x1xf32, #tpu.memory_space<vmem>>, vector<2x1xf32>
    %cst_9 = arith.constant dense<0xFF800000> : vector<2xf32>
    %10 = vector.multi_reduction <maximumf>, %7, %cst_9 [1] : vector<2x256xf32> to vector<2xf32>
    %11 = vector.shape_cast %10 : vector<2xf32> to vector<2x1xf32>
    %12 = arith.maximumf %9, %11 : vector<2x1xf32>
    %c0_10 = arith.constant 0 : index
    %c0_11 = arith.constant 0 : index
    %13 = vector.load %arg20[%c0_10, %c0_11] : memref<2x1xf32, #tpu.memory_space<vmem>>, vector<2x1xf32>
    %c0_12 = arith.constant 0 : index
    %c0_13 = arith.constant 0 : index
    %14 = vector.load %arg19[%c0_12, %c0_13] : memref<2x1xf32, #tpu.memory_space<vmem>>, vector<2x1xf32>
    %15 = arith.subf %14, %12 : vector<2x1xf32>
    %16 = math.exp %15 : vector<2x1xf32>
    %17 = arith.mulf %13, %16 : vector<2x1xf32>
    %18 = vector.broadcast %12 : vector<2x1xf32> to vector<2x256xf32>
    %19 = arith.subf %7, %18 : vector<2x256xf32>
    %20 = math.exp %19 : vector<2x256xf32>
    %cst_14 = arith.constant dense<0.000000e+00> : vector<2xf32>
    %21 = vector.multi_reduction <add>, %20, %cst_14 [1] : vector<2x256xf32> to vector<2xf32>
    %22 = vector.shape_cast %21 : vector<2xf32> to vector<2x1xf32>
    %23 = arith.addf %17, %22 : vector<2x1xf32>
    %c0_15 = arith.constant 0 : index
    %c0_16 = arith.constant 0 : index
    %24 = vector.load %arg20[%c0_15, %c0_16] : memref<2x1xf32, #tpu.memory_space<vmem>>, vector<2x1xf32>
    tpu.vector_store %arg20[%c0_15, %c0_16], %23 {strides = array<i32>} : memref<2x1xf32, #tpu.memory_space<vmem>>, vector<2x1xf32>,
    %c0_17 = arith.constant 0 : index
    %c0_18 = arith.constant 0 : index
    %25 = vector.load %arg19[%c0_17, %c0_18] : memref<2x1xf32, #tpu.memory_space<vmem>>, vector<2x1xf32>
    tpu.vector_store %arg19[%c0_17, %c0_18], %12 {strides = array<i32>} : memref<2x1xf32, #tpu.memory_space<vmem>>, vector<2x1xf32>,
    %c0_19 = arith.constant 0 : index
    %c0_20 = arith.constant 0 : index
    %26 = vector.load %arg13[%c0_19, %c0_20] : memref<32x128xbf16, #tpu.memory_space<vmem>>, vector<32x128xbf16>
    %c0_21 = arith.constant 0 : index
    %c0_22 = arith.constant 0 : index
    %27 = vector.load %arg9[%c0_21, %c0_22] : memref<128x256xbf16, #tpu.memory_space<vmem>>, vector<128x256xbf16>
    %cst_23 = arith.constant dense<0.000000e+00> : vector<32x256xf32>
    %28 = tpu.matmul %26, %27, %cst_23 {dimension_numbers = #tpu.dot_dimension_numbers<[1], [0], [0], [1], [0, 0, 1, 1], [], []>} : vector<32x128xbf16>, vector<128x256xbf16>, vector<32x256xf32> -> vector<32x256xf32>
    %cst_24 = arith.constant 5.000000e+00 : f32
    %29 = vector.broadcast %cst_24 : f32 to vector<32x256xf32>
    %30 = arith.mulf %28, %29 : vector<32x256xf32>
    %c0_25 = arith.constant 0 : index
    %c0_26 = arith.constant 0 : index
    %31 = vector.load %arg17[%c0_25, %c0_26] : memref<32x1xf32, #tpu.memory_space<vmem>>, vector<32x1xf32>
    %cst_27 = arith.constant dense<0xFF800000> : vector<32xf32>
    %32 = vector.multi_reduction <maximumf>, %30, %cst_27 [1] : vector<32x256xf32> to vector<32xf32>
    %33 = vector.shape_cast %32 : vector<32xf32> to vector<32x1xf32>
    %34 = arith.maximumf %31, %33 : vector<32x1xf32>
    %c0_28 = arith.constant 0 : index
    %c0_29 = arith.constant 0 : index
    %35 = vector.load %arg18[%c0_28, %c0_29] : memref<32x1xf32, #tpu.memory_space<vmem>>, vector<32x1xf32>
    %c0_30 = arith.constant 0 : index
    %c0_31 = arith.constant 0 : index
    %36 = vector.load %arg17[%c0_30, %c0_31] : memref<32x1xf32, #tpu.memory_space<vmem>>, vector<32x1xf32>
    %37 = arith.subf %36, %34 : vector<32x1xf32>
    %38 = math.exp %37 : vector<32x1xf32>
    %39 = arith.mulf %35, %38 : vector<32x1xf32>
    %40 = vector.broadcast %34 : vector<32x1xf32> to vector<32x256xf32>
    %41 = arith.subf %30, %40 : vector<32x256xf32>
    %42 = math.exp %41 : vector<32x256xf32>
    %cst_32 = arith.constant dense<0.000000e+00> : vector<32xf32>
    %43 = vector.multi_reduction <add>, %42, %cst_32 [1] : vector<32x256xf32> to vector<32xf32>
    %44 = vector.shape_cast %43 : vector<32xf32> to vector<32x1xf32>
    %45 = arith.addf %39, %44 : vector<32x1xf32>
    %c0_33 = arith.constant 0 : index
    %c0_34 = arith.constant 0 : index
    %46 = vector.load %arg18[%c0_33, %c0_34] : memref<32x1xf32, #tpu.memory_space<vmem>>, vector<32x1xf32>
    tpu.vector_store %arg18[%c0_33, %c0_34], %45 {strides = array<i32>} : memref<32x1xf32, #tpu.memory_space<vmem>>, vector<32x1xf32>,
    %c0_35 = arith.constant 0 : index
    %c0_36 = arith.constant 0 : index
    %47 = vector.load %arg17[%c0_35, %c0_36] : memref<32x1xf32, #tpu.memory_space<vmem>>, vector<32x1xf32>
    tpu.vector_store %arg17[%c0_35, %c0_36], %34 {strides = array<i32>} : memref<32x1xf32, #tpu.memory_space<vmem>>, vector<32x1xf32>,
    %c1_i32 = arith.constant 1 : i32
    %48 = arith.cmpi eq, %arg0, %c1_i32 : i32
    %49 = arith.extui %48 : i1 to i32
    %c0_i32_37 = arith.constant 0 : i32
    %50 = arith.cmpi ne, %49, %c0_i32_37 : i32
    scf.if %50 {
      %c0_38 = arith.constant 0 : index
      %c0_39 = arith.constant 0 : index
      %51 = vector.load %arg16[%c0_38, %c0_39] : memref<2x1xf32, #tpu.memory_space<vmem>>, vector<2x1xf32>
      %c0_40 = arith.constant 0 : index
      %c0_41 = arith.constant 0 : index
      %52 = vector.load %arg19[%c0_40, %c0_41] : memref<2x1xf32, #tpu.memory_space<vmem>>, vector<2x1xf32>
      %c0_42 = arith.constant 0 : index
      %c0_43 = arith.constant 0 : index
      %53 = vector.load %arg20[%c0_42, %c0_43] : memref<2x1xf32, #tpu.memory_space<vmem>>, vector<2x1xf32>
      %54 = arith.maximumf %51, %52 : vector<2x1xf32>
      %55 = arith.subf %51, %54 : vector<2x1xf32>
      %56 = math.exp %55 : vector<2x1xf32>
      %57 = arith.subf %52, %54 : vector<2x1xf32>
      %58 = math.exp %57 : vector<2x1xf32>
      %59 = arith.mulf %53, %58 : vector<2x1xf32>
      %60 = arith.addf %56, %59 : vector<2x1xf32>
      %61 = math.log %60 : vector<2x1xf32>
      %62 = arith.addf %54, %61 : vector<2x1xf32>
      %63 = arith.subf %62, %51 : vector<2x1xf32>
      %cst_44 = arith.constant dense<0.000000e+00> : vector<1xf32>
      %64 = vector.multi_reduction <add>, %63, %cst_44 [0] : vector<2x1xf32> to vector<1xf32>
      %65 = vector.shape_cast %64 : vector<1xf32> to vector<1x1xf32>
      %cst_45 = arith.constant 5.000000e-01 : f32
      %66 = vector.broadcast %cst_45 : f32 to vector<1x1xf32>
      %67 = arith.mulf %65, %66 : vector<1x1xf32>
      %c0_46 = arith.constant 0 : index
      %c0_47 = arith.constant 0 : index
      %68 = vector.load %arg14[%c0_46, %c0_47] : memref<32x1xf32, #tpu.memory_space<vmem>>, vector<32x1xf32>
      %c0_48 = arith.constant 0 : index
      %c0_49 = arith.constant 0 : index
      %69 = vector.load %arg17[%c0_48, %c0_49] : memref<32x1xf32, #tpu.memory_space<vmem>>, vector<32x1xf32>
      %c0_50 = arith.constant 0 : index
      %c0_51 = arith.constant 0 : index
      %70 = vector.load %arg18[%c0_50, %c0_51] : memref<32x1xf32, #tpu.memory_space<vmem>>, vector<32x1xf32>
      %71 = arith.maximumf %68, %69 : vector<32x1xf32>
      %72 = arith.subf %68, %71 : vector<32x1xf32>
      %73 = math.exp %72 : vector<32x1xf32>
      %74 = arith.subf %69, %71 : vector<32x1xf32>
      %75 = math.exp %74 : vector<32x1xf32>
      %76 = arith.mulf %70, %75 : vector<32x1xf32>
      %77 = arith.addf %73, %76 : vector<32x1xf32>
      %78 = math.log %77 : vector<32x1xf32>
      %79 = arith.addf %71, %78 : vector<32x1xf32>
      %80 = arith.subf %79, %68 : vector<32x1xf32>
      %cst_52 = arith.constant dense<0.000000e+00> : vector<1xf32>
      %81 = vector.multi_reduction <add>, %80, %cst_52 [0] : vector<32x1xf32> to vector<1xf32>
      %82 = vector.shape_cast %81 : vector<1xf32> to vector<1x1xf32>
      %cst_53 = arith.constant 3.125000e-02 : f32
      %83 = vector.broadcast %cst_53 : f32 to vector<1x1xf32>
      %84 = arith.mulf %82, %83 : vector<1x1xf32>
      %c0_54 = arith.constant 0 : index
      %c0_55 = arith.constant 0 : index
      %85 = vector.load %arg15[%c0_54, %c0_55] : memref<32x1xf32, #tpu.memory_space<vmem>>, vector<32x1xf32>
      %c0_56 = arith.constant 0 : index
      %c0_57 = arith.constant 0 : index
      %86 = vector.load %arg17[%c0_56, %c0_57] : memref<32x1xf32, #tpu.memory_space<vmem>>, vector<32x1xf32>
      %c0_58 = arith.constant 0 : index
      %c0_59 = arith.constant 0 : index
      %87 = vector.load %arg18[%c0_58, %c0_59] : memref<32x1xf32, #tpu.memory_space<vmem>>, vector<32x1xf32>
      %88 = arith.maximumf %85, %86 : vector<32x1xf32>
      %89 = arith.subf %85, %88 : vector<32x1xf32>
      %90 = math.exp %89 : vector<32x1xf32>
      %91 = arith.subf %86, %88 : vector<32x1xf32>
      %92 = math.exp %91 : vector<32x1xf32>
      %93 = arith.mulf %87, %92 : vector<32x1xf32>
      %94 = arith.addf %90, %93 : vector<32x1xf32>
      %95 = math.log %94 : vector<32x1xf32>
      %96 = arith.addf %88, %95 : vector<32x1xf32>
      %97 = arith.subf %96, %85 : vector<32x1xf32>
      %cst_60 = arith.constant dense<0.000000e+00> : vector<1xf32>
      %98 = vector.multi_reduction <add>, %97, %cst_60 [0] : vector<32x1xf32> to vector<1xf32>
      %99 = vector.shape_cast %98 : vector<1xf32> to vector<1x1xf32>
      %cst_61 = arith.constant 3.125000e-02 : f32
      %100 = vector.broadcast %cst_61 : f32 to vector<1x1xf32>
      %101 = arith.mulf %99, %100 : vector<1x1xf32>
      %102 = arith.addf %67, %101 : vector<1x1xf32>
      %103 = arith.addf %102, %84 : vector<1x1xf32>
      %cst_62 = arith.constant 0.333333343 : f32
      %104 = vector.broadcast %cst_62 : f32 to vector<1x1xf32>
      %105 = arith.mulf %103, %104 : vector<1x1xf32>
      %c0_63 = arith.constant 0 : index
      %c0_64 = arith.constant 0 : index
      %106 = vector.load %arg12[%c0_63, %c0_64] : memref<1x1xf32, #tpu.memory_space<vmem>>, vector<1x1xf32>
      tpu.vector_store %arg12[%c0_63, %c0_64], %105 {strides = array<i32>} : memref<1x1xf32, #tpu.memory_space<vmem>>, vector<1x1xf32>,
      %c0_65 = arith.constant 0 : index
      %c0_66 = arith.constant 0 : index
      %107 = vector.load %arg16[%c0_65, %c0_66] : memref<2x1xf32, #tpu.memory_space<vmem>>, vector<2x1xf32>
      %c0_67 = arith.constant 0 : index
      %c0_68 = arith.constant 0 : index
      %108 = vector.load %arg10[%c0_67, %c0_68] : memref<2x1xf32, #tpu.memory_space<vmem>>, vector<2x1xf32>
      tpu.vector_store %arg10[%c0_67, %c0_68], %107 {strides = array<i32>} : memref<2x1xf32, #tpu.memory_space<vmem>>, vector<2x1xf32>,
    } else {
    }
    return
  }
  func.func @transform_0(%arg0: i32) -> (i32, i32) {
    %c0_i32 = arith.constant 0 : i32
    %c0_i32_0 = arith.constant 0 : i32
    %c0_i32_1 = arith.constant 0 : i32
    return %c0_i32, %c0_i32_0 : i32, i32
  }
  func.func @transform_1(%arg0: i32) -> (i32, i32) {
    %c0_i32 = arith.constant 0 : i32
    %c0_i32_0 = arith.constant 0 : i32
    %c0_i32_1 = arith.constant 0 : i32
    return %c0_i32, %c0_i32_0 : i32, i32
  }
  func.func @transform_2(%arg0: i32) -> (i32, i32) {
    %c0_i32 = arith.constant 0 : i32
    %c0_i32_0 = arith.constant 0 : i32
    return %c0_i32, %arg0 : i32, i32
  }
  func.func @transform_3(%arg0: i32) -> (i32, i32, i32) {
    %c0_i32 = arith.constant 0 : i32
    %c0_i32_0 = arith.constant 0 : i32
    %c0_i32_1 = arith.constant 0 : i32
    %c0_i32_2 = arith.constant 0 : i32
    return %c0_i32, %c0_i32_0, %c0_i32_1 : i32, i32, i32
  }
  func.func @transform_4(%arg0: i32) -> (i32, i32, i32) {
    %c0_i32 = arith.constant 0 : i32
    %c0_i32_0 = arith.constant 0 : i32
    %c0_i32_1 = arith.constant 0 : i32
    %c0_i32_2 = arith.constant 0 : i32
    return %c0_i32, %c0_i32_0, %c0_i32_1 : i32, i32, i32
  }
  func.func @transform_5(%arg0: i32) -> (i32, i32, i32) {
    %c0_i32 = arith.constant 0 : i32
    %c0_i32_0 = arith.constant 0 : i32
    %c0_i32_1 = arith.constant 0 : i32
    %c0_i32_2 = arith.constant 0 : i32
    return %c0_i32, %c0_i32_0, %c0_i32_1 : i32, i32, i32
  }
  func.func @transform_6(%arg0: i32) -> (i32, i32, i32) {
    %c0_i32 = arith.constant 0 : i32
    %c0_i32_0 = arith.constant 0 : i32
    %c0_i32_1 = arith.constant 0 : i32
    %c0_i32_2 = arith.constant 0 : i32
    return %c0_i32, %c0_i32_0, %c0_i32_1 : i32, i32, i32
  }
  func.func @transform_7(%arg0: i32) -> (i32, i32, i32) {
    %c0_i32 = arith.constant 0 : i32
    %c0_i32_0 = arith.constant 0 : i32
    %c0_i32_1 = arith.constant 0 : i32
    %c0_i32_2 = arith.constant 0 : i32
    return %c0_i32, %c0_i32_0, %c0_i32_1 : i32, i32, i32
  }
  func.func @transform_8(%arg0: i32) -> (i32, i32) {
    %c0_i32 = arith.constant 0 : i32
    %c0_i32_0 = arith.constant 0 : i32
    return %c0_i32, %arg0 : i32, i32
  }
  func.func @transform_9(%arg0: i32) -> (i32, i32) {
    %c0_i32 = arith.constant 0 : i32
    %c0_i32_0 = arith.constant 0 : i32
    %c0_i32_1 = arith.constant 0 : i32
    return %c0_i32, %c0_i32_0 : i32, i32
  }
  func.func @transform_10(%arg0: i32) -> (i32, i32) {
    %c0_i32 = arith.constant 0 : i32
    %c0_i32_0 = arith.constant 0 : i32
    return %c0_i32, %arg0 : i32, i32
  }
  func.func @transform_11(%arg0: i32) -> (i32, i32) {
    %c0_i32 = arith.constant 0 : i32
    %c0_i32_0 = arith.constant 0 : i32
    %c0_i32_1 = arith.constant 0 : i32
    return %c0_i32, %c0_i32_0 : i32, i32
  }
}

</mosaic_0001>

<bundles_post_ra>
// kernel: densecl_pixcontrast_forward.1
= control target key start
LH: loop header
LB: loop body
LE: loop exit
PB: predicated region body
PF: predicated region fallthrough
CT: control target
= control target key end

     0   :  { %17 = vsyncpa [#allocation13], 0  ;;  %s2489_s17 = smov 0   ;;  %s2491_s18 = smov 0   ;;  %s3111_s0 = inlined_call_operand.vmem [shape: bf16[2,128], index: 0, kind: input, shape index: {}]   ;;  %s3112_s1 = inlined_call_operand.vmem [shape: bf16[2,128], index: 1, kind: input, shape index: {}]   ;;  %s3113_s2 = inlined_call_operand.vmem [shape: bf16[128,512], index: 2, kind: input, shape index: {}]   ;;  %s3114_s3 = inlined_call_operand.vmem [shape: f32[2,16,32], index: 3, kind: input, shape index: {}]   ;;  %s3115_s4 = inlined_call_operand.vmem [shape: f32[2,32,16], index: 4, kind: input, shape index: {}]   ;;  %s3116_s5 = inlined_call_operand.vmem [shape: bf16[2,16,128], index: 5, kind: input, shape index: {}]   ;;  %s3117_s6 = inlined_call_operand.vmem [shape: bf16[2,128,16], index: 6, kind: input, shape index: {}]   ;;  %s3118_s7 = inlined_call_operand.vmem [shape: s32[2,16,1], index: 7, kind: input, shape index: {}]   ;;  %s3119_s8 = inlined_call_operand.vmem [shape: bf16[128,512], index: 8, kind: input, shape index: {}]   ;;  %s3120_s9 = inlined_call_operand.vmem [shape: f32[2,1], index: 9, kind: output, shape index: {0}]   ;;  %s3121_s10 = inlined_call_operand.vmem [shape: f32[2,512], index: 10, kind: output, shape index: {1}]   ;;  %s3122_s11 = inlined_call_operand.hbm [shape: f32[1,1], index: 11, kind: output, shape index: {2}]  }
   0x1   :  { %s2493_s19 = smov 0  }
   0x2 LB: > { %s2505_s20 = sadd.s32 4294967295, %s2421_s19   ;;  %s2508_s21 = sadd.s32 1, %s2421_s19   ;;  %s2421_s19 = sphi %s2493_s19, %s3126_s19   ;;  %s2417_s18 = sphi %s2491_s18, %s3125_s18   ;;  %s2413_s17 = sphi %s2489_s17, %s3124_s17  }
   0x3   : > { %s69_s22 = ssub.s32 %s2421_s19, %s2508_s21  ;;  %s72_s23 = sadd.s32 1, %s2417_s18 }
   0x4   : > { %p70_p0 = scmp.eq.s32.totalorder %s69_s22, 0  ;;  %p79_p1 = scmp.ne.s32.totalorder %s2417_s18, %s2413_s17 }
   0x5   : > { %p80_p2 = scmp.eq.s32.totalorder %s2421_s19, 0  ;;  %p1974_p4 = scmp.ge.s32.totalorder %s2421_s19, 2 }
   0x6   : > { %s2517_s24 = scalar_select %p70_p0, %s2417_s18, %s72_s23  }
   0x7   : > { %p2519_p3 = por %p80_p2, %p79_p1  ;;  %325 = sbr.rel (%p1974_p4) target bundleno = 36 (0x24), region = 44 }
   0xc   : > { %328 = sbr.rel (!%p2519_p3) target bundleno = 24 (0x18), region = 48  ;;  %s330_s26 = sand.u32 (%p2519_p3), 1, %s2417_s18  }
   0xd   : > { %s2085_s27 = sshll.u32 (%p2519_p3), %s2421_s19, 3  ;;  %s1975_s28 = sshll.u32 (%p2519_p3), %s330_s26, 7 }
   0xe   : > { %s2531_s12 = scalar_lea.vmem (%p2519_p3), %s3113_s2, %s2085_s27  ;;  %s332_s13 = scalar_lea.vmem (%p2519_p3), [#allocation10], %s1975_s28 }
   0xf   : > { %v394_v0 = vld [vmem:[%s2531_s12] sm:$0xff] (%p2519_p3)  ;;  %v396_v1 = vld [vmem:[%s2531_s12 + $0x10] sm:$0xff] (%p2519_p3) }
  0x10   : > { %v398_v2 = vld [vmem:[%s2531_s12 + $0x20] sm:$0xff] (%p2519_p3)  ;;  %395 = vst [vmem:[%s332_s13] sm:$0xff] (%p2519_p3), %v394_v0  ;;  %397 = vst [vmem:[%s332_s13 + $0x8] sm:$0xff] (%p2519_p3), %v396_v1  ;;  %v400_v3 = vld [vmem:[%s2531_s12 + $0x30] sm:$0xff] (%p2519_p3) }
  0x11   : > { %399 = vst [vmem:[%s332_s13 + $0x10] sm:$0xff] %v398_v2  ;;  %v402_v4 = vld [vmem:[%s2531_s12 + $0x40] sm:$0xff]  ;;  %v404_v5 = vld [vmem:[%s2531_s12 + $0x50] sm:$0xff]  ;;  %401 = vst [vmem:[%s332_s13 + $0x18] sm:$0xff] %v400_v3 }
  0x12   : > { %403 = vst [vmem:[%s332_s13 + $0x20] sm:$0xff] %v402_v4  ;;  %405 = vst [vmem:[%s332_s13 + $0x28] sm:$0xff] %v404_v5  ;;  %v406_v6 = vld [vmem:[%s2531_s12 + $0x60] sm:$0xff]  ;;  %v408_v7 = vld [vmem:[%s2531_s12 + $0x70] sm:$0xff] }
  0x13   : > { %v410_v8 = vld [vmem:[%s2531_s12 + $0x80] sm:$0xff]  ;;  %407 = vst [vmem:[%s332_s13 + $0x30] sm:$0xff] %v406_v6  ;;  %409 = vst [vmem:[%s332_s13 + $0x38] sm:$0xff] %v408_v7  ;;  %v412_v9 = vld [vmem:[%s2531_s12 + $0x90] sm:$0xff] }
  0x14   : > { %411 = vst [vmem:[%s332_s13 + $0x40] sm:$0xff] %v410_v8  ;;  %v414_v10 = vld [vmem:[%s2531_s12 + $0xa0] sm:$0xff]  ;;  %v416_v11 = vld [vmem:[%s2531_s12 + $0xb0] sm:$0xff]  ;;  %413 = vst [vmem:[%s332_s13 + $0x48] sm:$0xff] %v412_v9 }
  0x15   : > { %415 = vst [vmem:[%s332_s13 + $0x50] sm:$0xff] %v414_v10  ;;  %417 = vst [vmem:[%s332_s13 + $0x58] sm:$0xff] %v416_v11  ;;  %v418_v12 = vld [vmem:[%s2531_s12 + $0xc0] sm:$0xff]  ;;  %v420_v13 = vld [vmem:[%s2531_s12 + $0xd0] sm:$0xff] }
  0x16   : > { %v422_v14 = vld [vmem:[%s2531_s12 + $0xe0] sm:$0xff]  ;;  %419 = vst [vmem:[%s332_s13 + $0x60] sm:$0xff] %v418_v12  ;;  %421 = vst [vmem:[%s332_s13 + $0x68] sm:$0xff] %v420_v13  ;;  %v424_v15 = vld [vmem:[%s2531_s12 + $0xf0] sm:$0xff] }
  0x17   : > { %423 = vst [vmem:[%s332_s13 + $0x70] sm:$0xff] %v422_v14  ;;  %425 = vst [vmem:[%s332_s13 + $0x78] sm:$0xff] %v424_v15 }
  0x18 PF: > { %431 = sbr.rel (!%p2519_p3) target bundleno = 36 (0x24), region = 86  ;;  %s433_s14 = sand.u32 (%p2519_p3), 1, %s2417_s18  }
  0x19   : > { %s2086_s15 = sshll.u32 (%p2519_p3), %s2421_s19, 3  ;;  %s1978_s16 = sshll.u32 (%p2519_p3), %s433_s14, 7 }
  0x1a   : > { %s2556_s26 = scalar_lea.vmem (%p2519_p3), %s3119_s8, %s2086_s15  ;;  %s435_s25 = scalar_lea.vmem (%p2519_p3), [#allocation11], %s1978_s16 }
  0x1b   : > { %v497_v16 = vld [vmem:[%s2556_s26] sm:$0xff] (%p2519_p3)  ;;  %v499_v17 = vld [vmem:[%s2556_s26 + $0x10] sm:$0xff] (%p2519_p3) }
  0x1c   : > { %v501_v18 = vld [vmem:[%s2556_s26 + $0x20] sm:$0xff] (%p2519_p3)  ;;  %498 = vst [vmem:[%s435_s25] sm:$0xff] (%p2519_p3), %v497_v16  ;;  %500 = vst [vmem:[%s435_s25 + $0x8] sm:$0xff] (%p2519_p3), %v499_v17  ;;  %v503_v19 = vld [vmem:[%s2556_s26 + $0x30] sm:$0xff] (%p2519_p3) }
  0x1d   : > { %502 = vst [vmem:[%s435_s25 + $0x10] sm:$0xff] %v501_v18  ;;  %v505_v20 = vld [vmem:[%s2556_s26 + $0x40] sm:$0xff]  ;;  %v507_v21 = vld [vmem:[%s2556_s26 + $0x50] sm:$0xff]  ;;  %504 = vst [vmem:[%s435_s25 + $0x18] sm:$0xff] %v503_v19 }
  0x1e   : > { %506 = vst [vmem:[%s435_s25 + $0x20] sm:$0xff] %v505_v20  ;;  %508 = vst [vmem:[%s435_s25 + $0x28] sm:$0xff] %v507_v21  ;;  %v509_v22 = vld [vmem:[%s2556_s26 + $0x60] sm:$0xff]  ;;  %v511_v23 = vld [vmem:[%s2556_s26 + $0x70] sm:$0xff] }
  0x1f   : > { %v513_v24 = vld [vmem:[%s2556_s26 + $0x80] sm:$0xff]  ;;  %510 = vst [vmem:[%s435_s25 + $0x30] sm:$0xff] %v509_v22  ;;  %512 = vst [vmem:[%s435_s25 + $0x38] sm:$0xff] %v511_v23  ;;  %v515_v25 = vld [vmem:[%s2556_s26 + $0x90] sm:$0xff] }
  0x20   : > { %514 = vst [vmem:[%s435_s25 + $0x40] sm:$0xff] %v513_v24  ;;  %v517_v26 = vld [vmem:[%s2556_s26 + $0xa0] sm:$0xff]  ;;  %v519_v27 = vld [vmem:[%s2556_s26 + $0xb0] sm:$0xff]  ;;  %516 = vst [vmem:[%s435_s25 + $0x48] sm:$0xff] %v515_v25 }
  0x21   : > { %518 = vst [vmem:[%s435_s25 + $0x50] sm:$0xff] %v517_v26  ;;  %520 = vst [vmem:[%s435_s25 + $0x58] sm:$0xff] %v519_v27  ;;  %v521_v28 = vld [vmem:[%s2556_s26 + $0xc0] sm:$0xff]  ;;  %v523_v29 = vld [vmem:[%s2556_s26 + $0xd0] sm:$0xff] }
  0x22   : > { %v525_v30 = vld [vmem:[%s2556_s26 + $0xe0] sm:$0xff]  ;;  %522 = vst [vmem:[%s435_s25 + $0x60] sm:$0xff] %v521_v28  ;;  %524 = vst [vmem:[%s435_s25 + $0x68] sm:$0xff] %v523_v29  ;;  %v527_v31 = vld [vmem:[%s2556_s26 + $0xf0] sm:$0xff] }
  0x23   : > { %526 = vst [vmem:[%s435_s25 + $0x70] sm:$0xff] %v525_v30  ;;  %528 = vst [vmem:[%s435_s25 + $0x78] sm:$0xff] %v527_v31 }
  0x24 PF: > { %p1981_p5 = scmp.ge.s32.totalorder %s2421_s19, 1  ;;  %p533_p6 = scmp.lt.s32.totalorder %s2421_s19, 3 }
  0x26   : > { %p534_p7 = pnand %p1981_p5, %p533_p6 }
  0x27   : > { %s540_s27 = sand.u32 (!%p534_p7), 1, %s2413_s17   ;;  %s1984_s28 = sshll.u32 (!%p534_p7), %s2505_s20, 1 }
  0x28   : > { %537 = sbr.rel (%p534_p7) target bundleno = 1633 (0x661), region = 124  ;;  %s1982_s29 = sshll.u32 (!%p534_p7), %s540_s27, 7 }
  0x29   : > { %p593_p8 = scmp.lt.s32.totalorder (!%p534_p7), %s1984_s28, 3  ;;  %s2583_s15 = scalar_lea.vmem (!%p534_p7), [#allocation10], %s1982_s29 }
  0x2a   : > { %s2585_s16 = scalar_lea.vmem (!%p534_p7), [#allocation11], %s1982_s29  ;;  %p1986_p9 = scmp.ne.s32.totalorder (!%p534_p7), %s2505_s20, 0 }
  0x2d   : > { %s3128_s28 = smov (!%p593_p8, %s1984_s28), 3  ;;  %602 = sbr.rel (%p1986_p9) target bundleno = 853 (0x355), region = 136 }
  0x2e   : > { %s1985_s30 = sshll.u32 %s3128_s28, 1 }
  0x2f   : > { %s2581_s14 = scalar_lea.vmem %s3121_s10, %s1985_s30 }
  0x32   : > { %v633_v32 = vld [vmem:[%s3115_s4 + $0x18] sm:$0xff]  ;;  %v914_v33 = vld [vmem:[%s3116_s5] sm:$0xff]   ;;  %v632_v35 = vld [vmem:[%s3115_s4 + $0x10] sm:$0xff]  ;;  %vm634_vm0 = vcmask 261120   ;;  %vm716_vm1 = vcmask 130048   ;;  %v2423_v55 = vmov 0.0   ;;  %v626_v8 = vlaneseq }
  0x33   : > { %v2007_v34 = vld [vmem:[%s3115_s4 + $0x38] sm:$0xff]  ;;  %2117 = vmatprep.subr.mxu1 %v633_v32  ;;  %916 = vst [vmem:[#allocation2] sm:$0xff] %v914_v33   ;;  %v2006_v36 = vld [vmem:[%s3115_s4 + $0x30] sm:$0xff]  ;;  %v631_v37 = vld [vmem:[%s3115_s4 + $0x8] sm:$0xff]  ;;  %vm2424_vm2 = vmmov 0   ;;  %v2425_v30 = vmov 0  }
  0x34   : > { %2148 = vmatprep.subr.mxu0 %v2007_v34  ;;  %2118 = vmatpush3.msra.mxu1 %v633_v32  ;;  %v2005_v38 = vld [vmem:[%s3115_s4 + $0x28] sm:$0xff]  ;;  %v630_v39 = vld [vmem:[%s3115_s4] sm:$0xff]  ;;  %v2002_v42 = vld [vmem:[%s3114_s3 + $0x10] sm:$0xff]  ;;  %v2715_v9 = vand.u32 127, %v626_v8  ;;  %vm613_vm11 = vcmask 1024   ;;  %vm615_vm12 = vcmask 7168  }
  0x35   : > { %2149 = vmatpush3.msra.mxu0 %v2007_v34  ;;  %2119 = vmatprep.subr.mxu1 %v632_v35  ;;  %v2004_v40 = vld [vmem:[%s3115_s4 + $0x20] sm:$0xff]  ;;  %v629_v43 = vld [vmem:[%s3114_s3 + $0x8] sm:$0xff]  ;;  %v2003_v44 = vld [vmem:[%s3114_s3 + $0x18] sm:$0xff]  ;;  %620 = vst.msk [vmem:[#allocation7] sm:$0xff] %vm615_vm12, %v2423_v55  ;;  %vm608_vm13 = vcmask 1041408  }
  0x36   : > { %2150 = vmatprep.subr.mxu0 %v2006_v36  ;;  %v628_v41 = vld [vmem:[%s3114_s3] sm:$0xff]  ;;  %2120 = vmatpush3.msra.mxu1 %v632_v35  ;;  %v2217_v53 = vld [vmem:[%s3117_s6 + $0x38] sm:$0xff]   ;;  %v2218_v56 = vld [vmem:[%s3117_s6 + $0x30] sm:$0xff]   ;;  %621 = vst.msk [vmem:[#allocation7 + $0x8] sm:$0xff] %vm615_vm12, %v2423_v55 }
  0x37   : > { %2151 = vmatpush3.msra.mxu0 %v2006_v36  ;;  %2121 = vmatprep.subr.mxu1 %v631_v37  ;;  %v2219_v54 = vld [vmem:[%s3117_s6 + $0x78] sm:$0xff]   ;;  %v2221_v57 = vld [vmem:[%s3117_s6 + $0x70] sm:$0xff]   ;;  %v2220_v58 = vld [vmem:[%s3117_s6 + $0x28] sm:$0xff]   ;;  %622 = vst.msk [vmem:[#allocation7 + $0x10] sm:$0xff] %vm615_vm12, %v2423_v55 }
  0x38   : > { %2152 = vmatprep.subr.mxu0 %v2005_v38  ;;  %2122 = vmatpush3.msra.mxu1 %v631_v37  ;;  %v2223_v59 = vld [vmem:[%s3117_s6 + $0x68] sm:$0xff]   ;;  %v2222_v60 = vld [vmem:[%s3117_s6 + $0x20] sm:$0xff]   ;;  %v2224_v62 = vld [vmem:[%s3117_s6 + $0x18] sm:$0xff]   ;;  %623 = vst.msk [vmem:[#allocation7 + $0x18] sm:$0xff] %vm615_vm12, %v2423_v55 }
  0x39   : > { %2153 = vmatpush3.msra.mxu0 %v2005_v38  ;;  %2123 = vmatprep.subr.mxu1 %v630_v39  ;;  %v2225_v61 = vld [vmem:[%s3117_s6 + $0x60] sm:$0xff]   ;;  %v2227_v63 = vld [vmem:[%s3117_s6 + $0x58] sm:$0xff]   ;;  %v2226_v0 = vld [vmem:[%s3117_s6 + $0x10] sm:$0xff]   ;;  %625 = vst.msk [vmem:[#allocation9] sm:$0x3] %vm613_vm11, %v2423_v55 }
  0x3a   : > { %2154 = vmatprep.subr.mxu0 %v2004_v40  ;;  %2124 = vmatpush3.msra.mxu1 %v630_v39  ;;  %v2229_v1 = vld [vmem:[%s3117_s6 + $0x50] sm:$0xff]   ;;  %v2228_v2 = vld [vmem:[%s3117_s6 + $0x8] sm:$0xff]   ;;  %v2230_v4 = vld [vmem:[%s3117_s6] sm:$0xff]  }
  0x3b   : > { %2125 = vmatprep.mubr.msk.f32.mxu1 %vm634_vm0, %v628_v41  ;;  %2155 = vmatpush3.msra.mxu0 %v2004_v40  ;;  %v2231_v3 = vld [vmem:[%s3117_s6 + $0x48] sm:$0xff]   ;;  %v2233_v5 = vld [vmem:[%s3117_s6 + $0x40] sm:$0xff]  }
  0x3c   : > { %2156 = vmatprep.mubr.msk.f32.mxu0 %vm634_vm0, %v2002_v42  ;;  %2126 = vmatmul.mubr.msk.f32.vlgmr.msra.gmra.mxu1 %vm634_vm0, %v629_v43  ;;  %v2232_v6 = vld [vmem:[%s3116_s5] sm:$0xff]   ;;  %v2234_v7 = vld [vmem:[%s3116_s5 + $0x8] sm:$0xff]  }
  0x3d   : > { %2157 = vmatmul.mubr.msk.f32.vlgmr.msra.gmra.mxu0 %vm634_vm0, %v2003_v44  ;;  %2128 = vmatprep.subr.bf16.mxu1 %v2423_v55 }
  0x3e   : > { %2159 = vmatprep.subr.bf16.mxu0 %v2423_v55  ;;  %2129 = vmatpush3.bf16.msra.mxu1 %v2217_v53 }
  0x3f   : > { %2160 = vmatpush3.bf16.msra.mxu0 %v2219_v54  ;;  %2130 = vmatprep.subr.bf16.mxu1 %v2423_v55  ;;  %v763_v54 = vld [vmem:[%s3118_s7] sm:$0xff] }
  0x40   : > { %2161 = vmatprep.subr.bf16.mxu0 %v2423_v55  ;;  %2144 = vmatprep.mubr.msk.bf16.mxu1 %vm2424_vm2, %v2423_v55 }
  0x41   : > { %2175 = vmatprep.mubr.msk.bf16.mxu0 %vm2424_vm2, %v2423_v55  ;;  %2216 = vset.pattern.permute.xlu1 %v2425_v30 }
  0x42   : > { %2131 = vmatpush3.bf16.msra.mxu1 %v2218_v56  ;;  %2215 = vset.pattern.permute.xlu0 %v2425_v30 }
  0x43   : > { %2162 = vmatpush3.bf16.msra.mxu0 %v2221_v57  ;;  %2132 = vmatprep.subr.bf16.mxu1 %v2423_v55  ;;  %v2012_v57 = vld [vmem:[%s3118_s7 + $0x10] sm:$0xff] }
  0x44   : > { %2163 = vmatprep.subr.bf16.mxu0 %v2423_v55 }
  0x46   : > { %2133 = vmatpush3.bf16.msra.mxu1 %v2220_v58 }
  0x47   : > { %2164 = vmatpush3.bf16.msra.mxu0 %v2223_v59  ;;  %2134 = vmatprep.subr.bf16.mxu1 %v2423_v55  ;;  %v2013_v59 = vld [vmem:[%s3118_s7 + $0x18] sm:$0xff] }
  0x48   : > { %2165 = vmatprep.subr.bf16.mxu0 %v2423_v55 }
  0x4a   : > { %2135 = vmatpush3.bf16.msra.mxu1 %v2222_v60  ;;  %v2426_v60 = vmov -inf  }
  0x4b   : > { %2166 = vmatpush3.bf16.msra.mxu0 %v2225_v61  ;;  %2136 = vmatprep.subr.bf16.mxu1 %v2423_v55  ;;  %616 = vst.msk [vmem:[#allocation6] sm:$0xff] %vm615_vm12, %v2426_v60  ;;  %617 = vst.msk [vmem:[#allocation6 + $0x8] sm:$0xff] %vm615_vm12, %v2426_v60  ;;  %v603_v61 = vld [vmem:[%s3111_s0] sm:$0x1] }
  0x4c   : > { %2167 = vmatprep.subr.bf16.mxu0 %v2423_v55  ;;  %618 = vst.msk [vmem:[#allocation6 + $0x10] sm:$0xff] %vm615_vm12, %v2426_v60  ;;  %619 = vst.msk [vmem:[#allocation6 + $0x18] sm:$0xff] %vm615_vm12, %v2426_v60 }
  0x4d   : > { %624 = vst.msk [vmem:[#allocation8] sm:$0x3] %vm613_vm11, %v2426_v60 }
  0x4e   : > { %2137 = vmatpush3.bf16.msra.mxu1 %v2224_v62  ;;  %v605_v62 = vld [vmem:[%s3112_s1] sm:$0x1] }
  0x4f   : > { %2168 = vmatpush3.bf16.msra.mxu0 %v2227_v63  ;;  %2138 = vmatprep.subr.bf16.mxu1 %v2423_v55  ;;  %v604_v63 = vunpack.c.l.bf16 %v603_v61 }
  0x50   : > { %2169 = vmatprep.subr.bf16.mxu0 %v2423_v55 }
  0x52   : > { %2139 = vmatpush3.bf16.msra.mxu1 %v2226_v0  ;;  %v606_v0 = vunpack.c.l.bf16 %v605_v62 }
  0x53   : > { %2170 = vmatpush3.bf16.msra.mxu0 %v2229_v1  ;;  %2140 = vmatprep.subr.bf16.mxu1 %v2423_v55 }
  0x54   : > { %2171 = vmatprep.subr.bf16.mxu0 %v2423_v55  ;;  %v607_v1 = vmul.f32 %v606_v0, %v604_v63 }
  0x56   : > { %2141 = vmatpush3.bf16.msra.mxu1 %v2228_v2  ;;  %v609_v2 = vsel %vm608_vm13, %v607_v1, 0.0 }
  0x57   : > { %2172 = vmatpush3.bf16.msra.mxu0 %v2231_v3  ;;  %2142 = vmatprep.subr.bf16.mxu1 %v2423_v55 }
  0x58   : > { %2173 = vmatprep.subr.bf16.mxu0 %v2423_v55 }
  0x5a   : > { %2143 = vmatpush3.bf16.msra.mxu1 %v2230_v4 }
  0x5b   : > { %2174 = vmatpush3.bf16.msra.mxu0 %v2233_v5 }
  0x5d   : > { %2145 = vmatmul.mubr.bf16.vlgmr.msra.gmra.mxu1 %v2232_v6 }
  0x5e   : > { %2176 = vmatmul.mubr.bf16.vlgmr.msra.gmra.mxu0 %v2234_v7 }
  0xfc   : > { %v2627_v45 = vpop.f32.mrf.mxu1 }
  0xfd   : > { %v2629_v46 = vpop.f32.mrf.mxu0  ;;  %v720_v52 = vsel %vm716_vm1, %v2627_v45, -inf }
  0xfe   : > { %v2631_v47 = vpop.f32.mrf.mxu1  ;;  %v1010_v51 = vsel %vm716_vm1, %v2629_v46, -inf }
  0xff   : > { %v2633_v48 = vpop.f32.mrf.mxu0  ;;  %v717_v50 = vsel %vm716_vm1, %v2631_v47, -inf }
 0x100   : > { %v1007_v49 = vsel %vm716_vm1, %v2633_v48, -inf  ;;  %718 = vmax.xlane.f32.xlu0 %v717_v50 }
 0x101   : > { %1008 = vmax.xlane.f32.xlu1 %v1007_v49 }
 0x104   : > { %721 = vmax.xlane.f32.xlu0 %v720_v52  ;;  %v764_v52 = vld [vmem:[%s3118_s7 + $0x8] sm:$0xff] }
 0x105   : > { %1011 = vmax.xlane.f32.xlu1 %v1010_v51 }
 0x11e   : > { %v2739_v51 = vpop.f32.mrf.mxu0 }
 0x120   : > { %v2177_v53 = vpop.f32.mrf.mxu0 }
 0x122   : > { %v2747_v56 = vpop.f32.mrf.mxu0 }
 0x124   : > { %v2178_v58 = vpop.f32.mrf.mxu0 }
 0x189   : > { %v719_v11 = vpop.xlane.xlu0 %718 }
 0x18a   : > { %v1009_v10 = vpop.xlane.xlu1 %1008  ;;  %vm723_vm4 = vcmp.eq.f32.partialorder %v2631_v47, %v719_v11  ;;  %v2735_v47 = vpop.f32.mrf.mxu1 }
 0x18b   : > { %vm1013_vm3 = vcmp.eq.f32.partialorder %v2633_v48, %v1009_v10  ;;  %v725_v13 = vsel %vm723_vm4, %v2715_v9, 16 }
 0x18c   : > { %v1015_v12 = vsel %vm1013_vm3, %v2715_v9, 16  ;;  %v727_v15 = vsel %vm716_vm1, %v725_v13, 2147483647  ;;  %v2146_v48 = vpop.f32.mrf.mxu1 }
 0x18d   : > { %v1017_v14 = vsel %vm716_vm1, %v1015_v12, 2147483647  ;;  %v722_v17 = vpop.xlane.xlu0 %721  ;;  %v729_v18 = vshra.s32 %v727_v15, 16  ;;  %v728_v31 = vand.u32 65535, %v727_v15 }
 0x18e   : > { %v1012_v16 = vpop.xlane.xlu1 %1011  ;;  %vm724_vm6 = vcmp.eq.f32.partialorder %v2627_v45, %v722_v17  ;;  %v1019_v22 = vshra.s32 %v1017_v14, 16  ;;  %v1018_v35 = vand.u32 65535, %v1017_v14  ;;  %v2737_v49 = vpop.f32.mrf.mxu1 }
 0x18f   : > { %vm1014_vm5 = vcmp.eq.f32.partialorder %v2629_v46, %v1012_v16  ;;  %v726_v20 = vsel %vm724_vm6, %v2715_v9, 16  ;;  %v731_v21 = vcvt.s32.f32 %v729_v18  ;;  %v730_v33 = vcvt.s32.f32 %v728_v31 }
 0x190   : > { %v1016_v19 = vsel %vm1014_vm5, %v2715_v9, 16  ;;  %v742_v24 = vsel %vm716_vm1, %v726_v20, 2147483647  ;;  %v1021_v27 = vcvt.s32.f32 %v1019_v22  ;;  %v1020_v40 = vcvt.s32.f32 %v1018_v35  ;;  %v2147_v50 = vpop.f32.mrf.mxu1 }
 0x191   : > { %v1032_v23 = vsel %vm716_vm1, %v1016_v19, 2147483647  ;;  %732 = vmin.xlane.f32.xlu0 %v731_v21  ;;  %v744_v25 = vshra.s32 %v742_v24, 16  ;;  %v743_v34 = vand.u32 65535, %v742_v24 }
 0x192   : > { %v1034_v28 = vshra.s32 %v1032_v23, 16  ;;  %v1033_v41 = vand.u32 65535, %v1032_v23 }
 0x193   : > { %v746_v26 = vcvt.s32.f32 %v744_v25  ;;  %v745_v39 = vcvt.s32.f32 %v743_v34 }
 0x194   : > { %v1036_v29 = vcvt.s32.f32 %v1034_v28  ;;  %v1035_v45 = vcvt.s32.f32 %v1033_v41 }
 0x195   : > { %747 = vmin.xlane.f32.xlu1 %v746_v26  ;;  %1022 = vmin.xlane.f32.xlu0 %v1021_v27 }
 0x199   : > { %1037 = vmin.xlane.f32.xlu1 %v1036_v29 }
 0x21a   : > { %v2729_v32 = vpop.xlane.xlu0 %732 }
 0x21b   : > { %vm734_vm7 = vcmp.eq.f32.partialorder %v731_v21, %v2729_v32  ;;  %v739_v7 = vcvt.f32.s32 %v2729_v32 }
 0x21c   : > { %v735_v36 = vsel %vm734_vm7, %v730_v33, inf }
 0x21d   : > { %736 = vmin.xlane.f32.xlu0 %v735_v36  ;;  %v740_v16 = vshll.u32 %v739_v7, 16 }
 0x21e   : > { %v748_v37 = vpop.xlane.xlu1 %747  ;;  %v2732_v38 = vpop.xlane.xlu0 %1022 }
 0x21f   : > { %vm749_vm8 = vcmp.eq.f32.partialorder %v746_v26, %v748_v37  ;;  %vm1024_vm9 = vcmp.eq.f32.partialorder %v1021_v27, %v2732_v38  ;;  %v754_v5 = vcvt.f32.s32 %v748_v37  ;;  %v1029_v19 = vcvt.f32.s32 %v2732_v38 }
 0x220   : > { %v750_v42 = vsel %vm749_vm8, %v745_v39, inf  ;;  %v1025_v43 = vsel %vm1024_vm9, %v1020_v40, inf }
 0x221   : > { %751 = vmin.xlane.f32.xlu1 %v750_v42  ;;  %1026 = vmin.xlane.f32.xlu0 %v1025_v43  ;;  %v755_v11 = vshll.u32 %v754_v5, 16 }
 0x222   : > { %v1038_v44 = vpop.xlane.xlu1 %1037 }
 0x223   : > { %vm1039_vm10 = vcmp.eq.f32.partialorder %v1036_v29, %v1038_v44  ;;  %v1044_v12 = vcvt.f32.s32 %v1038_v44  ;;  %v1030_v29 = vshll.u32 %v1029_v19, 16 }
 0x224   : > { %v1040_v46 = vsel %vm1039_vm10, %v1035_v45, inf }
 0x225   : > { %1041 = vmin.xlane.f32.xlu1 %v1040_v46  ;;  %v1045_v20 = vshll.u32 %v1044_v12, 16 }
 0x236   : > { %769 = vperm.xlu1 %2216, %v764_v52   ;;  %v2043_v52 = vld [vmem:[%s3116_s5 + $0x8] sm:$0xff]  }
 0x237   : > { %766 = vperm.xlu0 %2215, %v763_v54   ;;  %1209 = vst [vmem:[#allocation2 + $0x8] sm:$0xff] %v2043_v52  }
 0x23a   : > { %1057 = vperm.xlu1 %2216, %v2012_v57  }
 0x23e   : > { %1060 = vperm.xlu1 %2216, %v2013_v59  }
 0x262   : > { %610 = vadd.xlane.f32.xlu1 %v609_v2 }
 0x2a6   : > { %v737_v3 = vpop.xlane.xlu0 %736 }
 0x2a7   : > { %v738_v13 = vcvt.f32.s32 %v737_v3 }
 0x2a9   : > { %v741_v21 = vadd.s32 %v740_v16, %v738_v13 }
 0x2aa   : > { %v752_v4 = vpop.xlane.xlu1 %751  ;;  %v1027_v8 = vpop.xlane.xlu0 %1026 }
 0x2ab   : > { %v753_v6 = vcvt.f32.s32 %v752_v4  ;;  %v1028_v22 = vcvt.f32.s32 %v1027_v8  ;;  %vm757_vm3 = vcmp.eq.s32.totalorder %v2715_v9, %v741_v21 }
 0x2ac   : > { %v1989_v39 = vsel %vm757_vm3, 1.0, %v2423_v55 }
 0x2ad   : > { %v756_v14 = vadd.s32 %v755_v11, %v753_v6  ;;  %v1031_v34 = vadd.s32 %v1030_v29, %v1028_v22  ;;  %v902_v43 = vmul.f32 %v1989_v39, %v2735_v47 }
 0x2ae   : > { %v1042_v10 = vpop.xlane.xlu1 %1041 }
 0x2af   : > { %v1043_v15 = vcvt.f32.s32 %v1042_v10  ;;  %vm758_vm0 = vcmp.eq.s32.totalorder %v2715_v9, %v756_v14  ;;  %vm1047_vm6 = vcmp.eq.s32.totalorder %v2715_v9, %v1031_v34 }
 0x2b0   : > { %v1990_v32 = vsel %vm758_vm0, 1.0, %v2423_v55  ;;  %v2010_v48 = vsel %vm1047_vm6, 1.0, %v2423_v55 }
 0x2b1   : > { %v1046_v25 = vadd.s32 %v1045_v20, %v1043_v15  ;;  %v903_v37 = vmul.f32 %v1990_v32, %v2737_v49 }
 0x2b2   : > { %v770_v17 = vpop.permute.xlu1 %769  ;;  %v767_v18 = vpop.permute.xlu0 %766 }
 0x2b3   : > { %vm772_vm14 = vcmp.eq.s32.totalorder %v2715_v9, %v770_v17  ;;  %vm771_vm15 = vcmp.eq.s32.totalorder %v2715_v9, %v767_v18  ;;  %vm1048_vm4 = vcmp.eq.s32.totalorder %v2715_v9, %v1046_v25  ;;  %v907_v46 = vsel %vm716_vm1, %v903_v37, 0.0 }
 0x2b4   : > { %v1992_v23 = vsel %vm772_vm14, 1.0, %v2423_v55  ;;  %v1991_v24 = vsel %vm771_vm15, 1.0, %v2423_v55  ;;  %v2011_v40 = vsel %vm1048_vm4, 1.0, %v2423_v55 }
 0x2b5   : > { %v890_v26 = vmul.f32 %v1991_v24, %v2735_v47  ;;  %v891_v27 = vmul.f32 %v1992_v23, %v2737_v49  ;;  %v1196_v44 = vmul.f32 %v2011_v40, %v2747_v56  ;;  %v1195_v49 = vmul.f32 %v2010_v48, %v2739_v51 }
 0x2b6   : > { %v1058_v28 = vpop.permute.xlu1 %1057 }
 0x2b7   : > { %vm1062_vm2 = vcmp.eq.s32.totalorder %v2715_v9, %v1058_v28  ;;  %v892_v30 = vsel %vm716_vm1, %v890_v26, 0.0  ;;  %v895_v31 = vsel %vm716_vm1, %v891_v27, 0.0  ;;  %v1200_v50 = vsel %vm716_vm1, %v1196_v44, 0.0 }
 0x2b8   : > { %v2014_v33 = vsel %vm1062_vm2, 1.0, %v2423_v55  ;;  %893 = vadd.xlane.f32.xlu0 %v892_v30  ;;  %896 = vadd.xlane.f32.xlu1 %v895_v31  ;;  %v1197_v47 = vsel %vm716_vm1, %v1195_v49, 0.0 }
 0x2b9   : > { %v1183_v35 = vmul.f32 %v2014_v33, %v2739_v51 }
 0x2ba   : > { %v1061_v36 = vpop.permute.xlu1 %1060 }
 0x2bb   : > { %vm1063_vm5 = vcmp.eq.s32.totalorder %v2715_v9, %v1061_v36  ;;  %v1185_v38 = vsel %vm716_vm1, %v1183_v35, 0.0  ;;  %v904_v9 = vsel %vm716_vm1, %v902_v43, 0.0 }
 0x2bc   : > { %v2015_v41 = vsel %vm1063_vm5, 1.0, %v2423_v55  ;;  %1186 = vadd.xlane.f32.xlu1 %v1185_v38 }
 0x2bd   : > { %v1184_v42 = vmul.f32 %v2015_v41, %v2747_v56 }
 0x2bf   : > { %v1188_v45 = vsel %vm716_vm1, %v1184_v42, 0.0 }
 0x2c0   : > { %1189 = vadd.xlane.f32.xlu0 %v1188_v45  ;;  %908 = vadd.xlane.f32.xlu1 %v907_v46 }
 0x2c4   : > { %1201 = vadd.xlane.f32.xlu0 %v1200_v50  ;;  %905 = vadd.xlane.f32.xlu1 %v904_v9 }
 0x2c8   : > { %1198 = vadd.xlane.f32.xlu1 %v1197_v47 }
 0x2eb   : > { %v611_v53 = vpop.xlane.xlu1 %610 }
 0x2ec   : > { %v612_v55 = vmul.f32 5.0, %v611_v53 }
 0x2ee   : > { %614 = vst.msk [vmem:[#allocation5] sm:$0x3] %vm613_vm11, %v612_v55 }
 0x341   : > { %v894_v54 = vpop.xlane.xlu0 %893  ;;  %v897_v51 = vpop.xlane.xlu1 %896 }
 0x342   : > { %v898_v56 = vmul.f32 5.0, %v894_v54  ;;  %v899_v57 = vmul.f32 5.0, %v897_v51 }
 0x344   : > { %900 = vst.msk [vmem:[#allocation3] sm:$0xff] %vm615_vm12, %v898_v56  ;;  %901 = vst.msk [vmem:[#allocation3 + $0x8] sm:$0xff] %vm615_vm12, %v899_v57 }
 0x345   : > { %v1187_v58 = vpop.xlane.xlu1 %1186 }
 0x346   : > { %v1191_v59 = vmul.f32 5.0, %v1187_v58 }
 0x348   : > { %1193 = vst.msk [vmem:[#allocation3 + $0x10] sm:$0xff] %vm615_vm12, %v1191_v59 }
 0x349   : > { %v1190_v60 = vpop.xlane.xlu0 %1189  ;;  %v909_v61 = vpop.xlane.xlu1 %908 }
 0x34a   : > { %v1192_v62 = vmul.f32 5.0, %v1190_v60  ;;  %v911_v63 = vmul.f32 5.0, %v909_v61 }
 0x34c   : > { %1194 = vst.msk [vmem:[#allocation3 + $0x18] sm:$0xff] %vm615_vm12, %v1192_v62  ;;  %913 = vst.msk [vmem:[#allocation4 + $0x8] sm:$0xff] %vm615_vm12, %v911_v63 }
 0x34d   : > { %v1202_v0 = vpop.xlane.xlu0 %1201  ;;  %v906_v1 = vpop.xlane.xlu1 %905 }
 0x34e   : > { %v1204_v2 = vmul.f32 5.0, %v1202_v0  ;;  %v910_v3 = vmul.f32 5.0, %v906_v1 }
 0x350   : > { %1206 = vst.msk [vmem:[#allocation4 + $0x18] sm:$0xff] %vm615_vm12, %v1204_v2  ;;  %912 = vst.msk [vmem:[#allocation4] sm:$0xff] %vm615_vm12, %v910_v3 }
 0x351   : > { %v1199_v4 = vpop.xlane.xlu1 %1198 }
 0x352   : > { %v1203_v5 = vmul.f32 5.0, %v1199_v4 }
 0x354   : > { %1205 = vst.msk [vmem:[#allocation4 + $0x10] sm:$0xff] %vm615_vm12, %v1203_v5 }
 0x355 PF: > { %v2237_v6 = vld [vmem:[%s2583_s15 + $0x74] ss:$8 sps:$4 sm:$0xff]   ;;  %v2427_v8 = vmov 0   ;;  %v2241_v10 = vld [vmem:[%s2583_s15 + $0x70] ss:$8 sps:$4 sm:$0xff]   ;;  %vm1364_vm1 = vcmask 1041408  }
 0x356   : > { %v2239_v7 = vld [vmem:[%s2585_s16 + $0x74] ss:$8 sps:$4 sm:$0xff]   ;;  %1340 = vmatprep.mubr.bf16.mxu0 %v2427_v8  ;;  %1540 = vmatprep.mubr.bf16.mxu1 %v2427_v8  ;;  %v2242_v11 = vld [vmem:[%s2585_s16 + $0x70] ss:$8 sps:$4 sm:$0xff]   ;;  %v2243_v12 = vld [vmem:[%s2583_s15 + $0x64] ss:$8 sps:$4 sm:$0xff]  }
 0x357   : > { %1308 = vmatprep.subr.bf16.mxu0 %v2237_v6  ;;  %2235 = vset.pattern.permute.xlu0 %v2427_v8  ;;  %v2245_v13 = vld [vmem:[%s2585_s16 + $0x64] ss:$8 sps:$4 sm:$0xff]   ;;  %v2247_v14 = vld [vmem:[%s2583_s15 + $0x60] ss:$8 sps:$4 sm:$0xff]   ;;  %v2249_v16 = vld [vmem:[%s2583_s15 + $0x54] ss:$8 sps:$4 sm:$0xff]  }
 0x358   : > { %1508 = vmatprep.subr.bf16.mxu1 %v2239_v7  ;;  %2236 = vset.pattern.permute.xlu1 %v2427_v8  ;;  %v2248_v15 = vld [vmem:[%s2585_s16 + $0x60] ss:$8 sps:$4 sm:$0xff]   ;;  %v2251_v17 = vld [vmem:[%s2585_s16 + $0x54] ss:$8 sps:$4 sm:$0xff]   ;;  %v2253_v18 = vld [vmem:[%s2583_s15 + $0x50] ss:$8 sps:$4 sm:$0xff]  }
 0x359   : > { %1309 = vmatpush1.bf16.msra.mxu0 %v2241_v10  ;;  %1509 = vmatpush1.bf16.msra.mxu1 %v2242_v11  ;;  %v2254_v19 = vld [vmem:[%s2585_s16 + $0x50] ss:$8 sps:$4 sm:$0xff]   ;;  %v2255_v20 = vld [vmem:[%s2583_s15 + $0x44] ss:$8 sps:$4 sm:$0xff]   ;;  %v2259_v22 = vld [vmem:[%s2583_s15 + $0x40] ss:$8 sps:$4 sm:$0xff]  }
 0x35a   : > { %1310 = vmatprep.subr.bf16.mxu0 %v2243_v12  ;;  %1510 = vmatprep.subr.bf16.mxu1 %v2245_v13  ;;  %v2257_v21 = vld [vmem:[%s2585_s16 + $0x44] ss:$8 sps:$4 sm:$0xff]   ;;  %v2260_v23 = vld [vmem:[%s2585_s16 + $0x40] ss:$8 sps:$4 sm:$0xff]   ;;  %v2261_v24 = vld [vmem:[%s2583_s15 + $0x34] ss:$8 sps:$4 sm:$0xff]  }
 0x35b   : > { %v2263_v25 = vld [vmem:[%s2585_s16 + $0x34] ss:$8 sps:$4 sm:$0xff]   ;;  %v2265_v26 = vld [vmem:[%s2583_s15 + $0x30] ss:$8 sps:$4 sm:$0xff]   ;;  %v2267_v28 = vld [vmem:[%s2583_s15 + $0x24] ss:$8 sps:$4 sm:$0xff]  }
 0x35c   : > { %v2266_v27 = vld [vmem:[%s2585_s16 + $0x30] ss:$8 sps:$4 sm:$0xff]   ;;  %v2269_v29 = vld [vmem:[%s2585_s16 + $0x24] ss:$8 sps:$4 sm:$0xff]   ;;  %v2271_v30 = vld [vmem:[%s2583_s15 + $0x20] ss:$8 sps:$4 sm:$0xff]  }
 0x35d   : > { %1311 = vmatpush1.bf16.msra.mxu0 %v2247_v14  ;;  %1511 = vmatpush1.bf16.msra.mxu1 %v2248_v15  ;;  %v2272_v31 = vld [vmem:[%s2585_s16 + $0x20] ss:$8 sps:$4 sm:$0xff]   ;;  %v2273_v32 = vld [vmem:[%s2583_s15 + $0x14] ss:$8 sps:$4 sm:$0xff]   ;;  %v2277_v34 = vld [vmem:[%s2583_s15 + $0x10] ss:$8 sps:$4 sm:$0xff]  }
 0x35e   : > { %1312 = vmatprep.subr.bf16.mxu0 %v2249_v16  ;;  %1512 = vmatprep.subr.bf16.mxu1 %v2251_v17  ;;  %v2275_v33 = vld [vmem:[%s2585_s16 + $0x14] ss:$8 sps:$4 sm:$0xff]   ;;  %v2278_v35 = vld [vmem:[%s2585_s16 + $0x10] ss:$8 sps:$4 sm:$0xff]   ;;  %v2279_v36 = vld [vmem:[%s2583_s15 + $0x4] ss:$8 sps:$4 sm:$0xff]  }
 0x35f   : > { %v2281_v37 = vld [vmem:[%s2585_s16 + $0x4] ss:$8 sps:$4 sm:$0xff]   ;;  %v2283_v38 = vld [vmem:[%s2583_s15] ss:$8 sps:$4 sm:$0xff]   ;;  %v2286_v42 = vld [vmem:[#allocation2 + $0x8] sm:$0xff]   ;;  %vm1669_vm7 = vcmask 7168  }
 0x360   : > { %v2284_v39 = vld [vmem:[%s2585_s16] ss:$8 sps:$4 sm:$0xff]   ;;  %v2904_v13 = vld [vmem:[#allocation8] sm:$0x3]  ;;  %vm1393_vm8 = vcmask 1024   ;;  %p2080_p10 = scmp.ne.s32.totalorder %s2505_s20, 1 }
 0x361   : > { %1313 = vmatpush1.bf16.msra.mxu0 %v2253_v18  ;;  %1513 = vmatpush1.bf16.msra.mxu1 %v2254_v19  ;;  %v2285_v40 = vld [vmem:[#allocation2] sm:$0xff]  }
 0x362   : > { %1314 = vmatprep.subr.bf16.mxu0 %v2255_v20  ;;  %1514 = vmatprep.subr.bf16.mxu1 %v2257_v21  ;;  %v1211_v41 = vld [vmem:[%s3111_s0] sm:$0x1]  ;;  %v2917_v19 = vld [vmem:[#allocation6 + $0x10] sm:$0xff] }
 0x363   : > { %v2902_v12 = vld [vmem:[#allocation6 + $0x8] sm:$0xff] }
 0x365   : > { %1315 = vmatpush1.bf16.msra.mxu0 %v2259_v22  ;;  %1515 = vmatpush1.bf16.msra.mxu1 %v2260_v23 }
 0x366   : > { %1316 = vmatprep.subr.bf16.mxu0 %v2261_v24  ;;  %1516 = vmatprep.subr.bf16.mxu1 %v2263_v25  ;;  %v2931_v24 = vld [vmem:[#allocation6 + $0x18] sm:$0xff] }
 0x369   : > { %1317 = vmatpush1.bf16.msra.mxu0 %v2265_v26  ;;  %1517 = vmatpush1.bf16.msra.mxu1 %v2266_v27 }
 0x36a   : > { %1318 = vmatprep.subr.bf16.mxu0 %v2267_v28  ;;  %1518 = vmatprep.subr.bf16.mxu1 %v2269_v29 }
 0x36d   : > { %1319 = vmatpush1.bf16.msra.mxu0 %v2271_v30  ;;  %1519 = vmatpush1.bf16.msra.mxu1 %v2272_v31 }
 0x36e   : > { %1320 = vmatprep.subr.bf16.mxu0 %v2273_v32  ;;  %1520 = vmatprep.subr.bf16.mxu1 %v2275_v33 }
 0x371   : > { %1321 = vmatpush1.bf16.msra.mxu0 %v2277_v34  ;;  %1521 = vmatpush1.bf16.msra.mxu1 %v2278_v35 }
 0x372   : > { %1322 = vmatprep.subr.bf16.mxu0 %v2279_v36  ;;  %1522 = vmatprep.subr.bf16.mxu1 %v2281_v37 }
 0x375   : > { %1323 = vmatpush1.bf16.msra.mxu0 %v2283_v38  ;;  %1523 = vmatpush1.bf16.msra.mxu1 %v2284_v39 }
 0x378   : > { %1341 = vmatmul.mubr.bf16.vlgmr.msra.gmra.mxu0 %v1211_v41  ;;  %1541 = vmatmul.mubr.bf16.vlgmr.msra.gmra.mxu1 %v2285_v40 }
 0x379   : > { %1550 = vmatprep.mubr.bf16.mxu1 %v2427_v8  ;;  %v2897_v8 = vld [vmem:[#allocation6] sm:$0xff] }
 0x380   : > { %1551 = vmatmul.mubr.bf16.gmra.mxu1 %v2286_v42 }
 0x438   : > { %v1342_v43 = vpop.f32.mrf.mxu0  ;;  %v1542_v44 = vpop.f32.mrf.mxu1 }
 0x439   : > { %v2862_v45 = vmul.f32 5.0, %v1342_v43  ;;  %v2864_v49 = vmul.f32 5.0, %v1542_v44 }
 0x43a   : > { %v1344_v46 = vpop.f32.mrf.mxu0  ;;  %v1544_v48 = vpop.f32.mrf.mxu1 }
 0x43b   : > { %v2866_v50 = vmul.f32 5.0, %v1344_v46  ;;  %v2868_v9 = vmul.f32 5.0, %v1544_v48  ;;  %v1365_v56 = vsel %vm1364_vm1, %v2862_v45, -inf }
 0x43c   : > { %v1346_v47 = vpop.f32.mrf.mxu0  ;;  %v1546_v52 = vpop.f32.mrf.mxu1 }
 0x43d   : > { %v1353_v53 = vcombine.low %v2862_v45, %v2866_v50  ;;  %v1573_v55 = vmax.f32 %v2864_v49, %v2868_v9  ;;  %v1366_v57 = vsel %vm1364_vm1, %v2866_v50, -inf  ;;  %v2879_v58 = vmul.f32 5.0, %v1546_v52 }
 0x43e   : > { %v1347_v54 = vpop.f32.mrf.mxu0  ;;  %v1548_v51 = vpop.f32.mrf.mxu1  ;;  %v1367_v63 = vmax.f32 %v1365_v56, %v1366_v57 }
 0x43f   : > { %2061 = vst.sshfl [vmem:[%s2581_s14] sm:$0x33 pattern:$0x76325410] %v1353_v53  ;;  %v2881_v59 = vmul.f32 5.0, %v1548_v51  ;;  %1574 = vmax.xlane.f32.xlu0 %v1573_v55 }
 0x440   : > { %v1552_v60 = vpop.f32.mrf.mxu1 }
 0x441   : > { %v2883_v61 = vmul.f32 5.0, %v1552_v60  ;;  %v1576_v62 = vmax.f32 %v2879_v58, %v2881_v59 }
 0x442   : > { %v1554_v0 = vpop.f32.mrf.mxu1 }
 0x443   : > { %v2887_v1 = vmul.f32 5.0, %v1554_v0  ;;  %1577 = vmax.xlane.f32.xlu1 %v1576_v62  ;;  %1368 = vmax.xlane.f32.xlu0 %v1367_v63 }
 0x444   : > { %v1556_v2 = vpop.f32.mrf.mxu1 }
 0x445   : > { %v2889_v3 = vmul.f32 5.0, %v1556_v2  ;;  %v1579_v4 = vmax.f32 %v2883_v61, %v2887_v1 }
 0x446   : > { %v1558_v5 = vpop.f32.mrf.mxu1 }
 0x447   : > { %v2893_v6 = vmul.f32 5.0, %v1558_v5  ;;  %1580 = vmax.xlane.f32.xlu1 %v1579_v4 }
 0x449   : > { %v1582_v7 = vmax.f32 %v2889_v3, %v2893_v6 }
 0x44b   : > { %1583 = vmax.xlane.f32.xlu0 %v1582_v7 }
 0x4c8   : > { %v1575_v10 = vpop.xlane.xlu0 %1574 }
 0x4c9   : > { %v2900_v11 = vmax.f32 %v2897_v8, %v1575_v10 }
 0x4cb   : > { %v1593_v14 = vsub.f32 %v2897_v8, %v2900_v11  ;;  %1674 = vst.msk [vmem:[#allocation6] sm:$0xff] %vm1669_vm7, %v2900_v11  ;;  %1611 = vperm.xlu0 %2235, %v2900_v11   ;;  %v1589_v11 = vld [vmem:[#allocation7] sm:$0xff] }
 0x4cc   : > { %v1578_v15 = vpop.xlane.xlu1 %1577  ;;  %v1369_v16 = vpop.xlane.xlu0 %1368 }
 0x4cd   : > { %v2912_v17 = vmax.f32 %v2902_v12, %v1578_v15  ;;  %v2915_v18 = vmax.f32 %v2904_v13, %v1369_v16 }
 0x4cf   : > { %v1594_v20 = vsub.f32 %v2902_v12, %v2912_v17  ;;  %1675 = vst.msk [vmem:[#allocation6 + $0x8] sm:$0xff] %vm1669_vm7, %v2912_v17  ;;  %v1372_v21 = vsub.f32 %v2904_v13, %v2915_v18  ;;  %1378 = vperm.xlu1 %2236, %v2915_v18   ;;  %v1371_v12 = vld [vmem:[#allocation9] sm:$0x3] }
 0x4d0   : > { %1395 = vst.msk [vmem:[#allocation8] sm:$0x3] %vm1393_vm8, %v2915_v18  ;;  %v1581_v22 = vpop.xlane.xlu1 %1580 }
 0x4d1   : > { %v2929_v23 = vmax.f32 %v2917_v19, %v1581_v22  ;;  %v1373_v7 = vmul.f32 1.442695, %v1372_v21  ;;  %v1599_v10 = vmul.f32 1.442695, %v1594_v20 }
 0x4d3   : > { %v1595_v25 = vsub.f32 %v2917_v19, %v2929_v23  ;;  %1676 = vst.msk [vmem:[#allocation6 + $0x10] sm:$0xff] %vm1669_vm7, %v2929_v23  ;;  %1616 = vperm.xlu1 %2236, %v2912_v17   ;;  %v1590_v19 = vld [vmem:[#allocation7 + $0x8] sm:$0xff] }
 0x4d4   : > { %v1584_v26 = vpop.xlane.xlu0 %1583 }
 0x4d5   : > { %v2939_v27 = vmax.f32 %v2931_v24, %v1584_v26  ;;  %v1601_v15 = vmul.f32 1.442695, %v1595_v25 }
 0x4d7   : > { %v1596_v28 = vsub.f32 %v2931_v24, %v2939_v27  ;;  %1677 = vst.msk [vmem:[#allocation6 + $0x18] sm:$0xff] %vm1669_vm7, %v2939_v27  ;;  %1621 = vperm.xlu1 %2236, %v2929_v23  }
 0x4d9   : > { %v1603_v8 = vmul.f32 1.442695, %v1596_v28 }
 0x4db   : > { %1626 = vperm.xlu1 %2236, %v2939_v27   ;;  %v1591_v27 = vld [vmem:[#allocation7 + $0x10] sm:$0xff] }
 0x546   : > { %v1612_v29 = vpop.permute.xlu0 %1611 }
 0x547   : > { %v1629_v30 = vsub.f32 %v2864_v49, %v1612_v29  ;;  %v1630_v31 = vsub.f32 %v2868_v9, %v1612_v29 }
 0x549   : > { %v1637_v32 = vmul.f32 1.442695, %v1629_v30  ;;  %v1639_v33 = vmul.f32 1.442695, %v1630_v31 }
 0x54a   : > { %v1379_v34 = vpop.permute.xlu1 %1378 }
 0x54b   : > { %2287 = vpow2.f32 %v1637_v32  ;;  %v1381_v35 = vsub.f32 %v2862_v45, %v1379_v34  ;;  %v1382_v36 = vsub.f32 %v2866_v50, %v1379_v34  ;;  %v1592_v32 = vld [vmem:[#allocation7 + $0x18] sm:$0xff] }
 0x54c   : > { %2289 = vpow2.f32 %v1639_v33 }
 0x54d   : > { %v1383_v37 = vmul.f32 1.442695, %v1381_v35  ;;  %v1385_v38 = vmul.f32 1.442695, %v1382_v36 }
 0x54e   : > { %v1617_v39 = vpop.permute.xlu1 %1616 }
 0x54f   : > { %2291 = vpow2.f32 %v1383_v37  ;;  %v1631_v40 = vsub.f32 %v2879_v58, %v1617_v39  ;;  %v1632_v41 = vsub.f32 %v2881_v59, %v1617_v39 }
 0x550   : > { %2293 = vpow2.f32 %v1385_v38 }
 0x551   : > { %v1641_v42 = vmul.f32 1.442695, %v1631_v40  ;;  %v1643_v43 = vmul.f32 1.442695, %v1632_v41 }
 0x552   : > { %v1622_v44 = vpop.permute.xlu1 %1621 }
 0x553   : > { %2295 = vpow2.f32 %v1641_v42  ;;  %v1633_v46 = vsub.f32 %v2883_v61, %v1622_v44  ;;  %v1634_v45 = vsub.f32 %v2887_v1, %v1622_v44 }
 0x554   : > { %2297 = vpow2.f32 %v1643_v43 }
 0x555   : > { %v1645_v48 = vmul.f32 1.442695, %v1633_v46  ;;  %v1647_v49 = vmul.f32 1.442695, %v1634_v45 }
 0x556   : > { %v1627_v50 = vpop.permute.xlu1 %1626 }
 0x557   : > { %2299 = vpow2.f32 %v1645_v48  ;;  %v1635_v9 = vsub.f32 %v2889_v3, %v1627_v50  ;;  %v1636_v47 = vsub.f32 %v2893_v6, %v1627_v50  ;;  %v1597_v6 = vmul.f32 1.442695, %v1593_v14 }
 0x558   : > { %v2288_v52 = vpop.eup %2287  ;;  %2301 = vpow2.f32 %v1647_v49 }
 0x559   : > { %v2290_v53 = vpop.eup %2289  ;;  %v1649_v55 = vmul.f32 1.442695, %v1635_v9  ;;  %v1651_v54 = vmul.f32 1.442695, %v1636_v47 }
 0x55a   : > { %v1653_v51 = vadd.f32 %v2290_v53, %v2288_v52 }
 0x55b   : > { %2303 = vpow2.f32 %v1649_v55 }
 0x55c   : > { %v2292_v56 = vpop.eup %2291  ;;  %2305 = vpow2.f32 %v1651_v54  ;;  %1654 = vadd.xlane.f32.xlu0 %v1653_v51 }
 0x55d   : > { %v2294_v57 = vpop.eup %2293  ;;  %v1387_v58 = vsel %vm1364_vm1, %v2292_v56, 0.0  ;;  %2307 = vpow2.f32 %v1597_v6 }
 0x55e   : > { %v1388_v59 = vsel %vm1364_vm1, %v2294_v57, 0.0  ;;  %2309 = vpow2.f32 %v1373_v7 }
 0x55f   : > { %v1389_v60 = vadd.f32 %v1388_v59, %v1387_v58  ;;  %2311 = vpow2.f32 %v1599_v10 }
 0x560   : > { %v2296_v61 = vpop.eup %2295  ;;  %2313 = vpow2.f32 %v1601_v15 }
 0x561   : > { %v2298_v62 = vpop.eup %2297  ;;  %1390 = vadd.xlane.f32.xlu1 %v1389_v60  ;;  %2315 = vpow2.f32 %v1603_v8 }
 0x562   : > { %v1656_v63 = vadd.f32 %v2298_v62, %v2296_v61 }
 0x564   : > { %v2300_v0 = vpop.eup %2299 }
 0x565   : > { %v2302_v1 = vpop.eup %2301  ;;  %1657 = vadd.xlane.f32.xlu1 %v1656_v63 }
 0x566   : > { %v1659_v2 = vadd.f32 %v2302_v1, %v2300_v0 }
 0x568   : > { %v2304_v3 = vpop.eup %2303 }
 0x569   : > { %v2306_v4 = vpop.eup %2305  ;;  %1660 = vadd.xlane.f32.xlu1 %v1659_v2 }
 0x56a   : > { %v1662_v5 = vadd.f32 %v2306_v4, %v2304_v3  ;;  %v2308_v16 = vpop.eup %2307 }
 0x56b   : > { %v1605_v14 = vmul.f32 %v2308_v16, %v1589_v11  ;;  %v2310_v18 = vpop.eup %2309 }
 0x56c   : > { %v1375_v17 = vmul.f32 %v2310_v18, %v1371_v12  ;;  %v2312_v20 = vpop.eup %2311 }
 0x56d   : > { %1663 = vadd.xlane.f32.xlu1 %v1662_v5  ;;  %v1606_v25 = vmul.f32 %v2312_v20, %v1590_v19  ;;  %v2314_v26 = vpop.eup %2313 }
 0x56e   : > { %v1607_v29 = vmul.f32 %v2314_v26, %v1591_v27  ;;  %v2316_v30 = vpop.eup %2315 }
 0x56f   : > { %v1608_v34 = vmul.f32 %v2316_v30, %v1592_v32 }
 0x5e5   : > { %v1655_v13 = vpop.xlane.xlu0 %1654 }
 0x5e6   : > { %v1665_v21 = vadd.f32 %v1655_v13, %v1605_v14 }
 0x5e8   : > { %1670 = vst.msk [vmem:[#allocation7] sm:$0xff] %vm1669_vm7, %v1665_v21 }
 0x5ea   : > { %v1391_v22 = vpop.xlane.xlu1 %1390 }
 0x5eb   : > { %v1392_v23 = vadd.f32 %v1391_v22, %v1375_v17 }
 0x5ed   : > { %1394 = vst.msk [vmem:[#allocation9] sm:$0x3] %vm1393_vm8, %v1392_v23 }
 0x5ee   : > { %v1658_v24 = vpop.xlane.xlu1 %1657 }
 0x5ef   : > { %v1666_v28 = vadd.f32 %v1658_v24, %v1606_v25 }
 0x5f1   : > { %1671 = vst.msk [vmem:[#allocation7 + $0x8] sm:$0xff] %vm1669_vm7, %v1666_v28 }
 0x5f2   : > { %v1661_v31 = vpop.xlane.xlu1 %1660 }
 0x5f3   : > { %v1667_v33 = vadd.f32 %v1661_v31, %v1607_v29 }
 0x5f5   : > { %1672 = vst.msk [vmem:[#allocation7 + $0x10] sm:$0xff] %vm1669_vm7, %v1667_v33  ;;  %1681 = sbr.rel (%p2080_p10) target bundleno = 1618 (0x652), region = 140 }
 0x5f6   : > { %v1664_v35 = vpop.xlane.xlu1 %1663 }
 0x5f7   : > { %v1668_v36 = vadd.f32 %v1664_v35, %v1608_v34 }
 0x5f9   : > { %1673 = vst.msk [vmem:[#allocation7 + $0x18] sm:$0xff] %vm1669_vm7, %v1668_v36 }
 0x5fa   : > { %v2980_v37 = vld [vmem:[#allocation5] sm:$0x3]  ;;  %v1683_v38 = vld [vmem:[#allocation8] sm:$0x3]  ;;  %v2987_v41 = vld [vmem:[#allocation3 + $0x8] sm:$0xff]  ;;  %vm1857_vm9 = vcmask 0  }
 0x5fb   : > { %v2983_v39 = vmax.f32 %v2980_v37, %v1683_v38  ;;  %v2985_v40 = vld [vmem:[#allocation3] sm:$0xff]  ;;  %v2989_v42 = vld [vmem:[#allocation3 + $0x10] sm:$0xff]  ;;  %v2991_v43 = vld [vmem:[#allocation3 + $0x18] sm:$0xff] }
 0x5fc   : > { %v1710_v44 = vld [vmem:[#allocation6] sm:$0xff]  ;;  %v1711_v46 = vld [vmem:[#allocation6 + $0x8] sm:$0xff]  ;;  %v1712_v49 = vld [vmem:[#allocation6 + $0x10] sm:$0xff] }
 0x5fd   : > { %v1686_v45 = vsub.f32 %v2980_v37, %v2983_v39  ;;  %v1689_v48 = vsub.f32 %v1683_v38, %v2983_v39  ;;  %v2996_v50 = vld [vmem:[#allocation6 + $0x18] sm:$0xff]  ;;  %v2999_v9 = vmax.f32 %v2985_v40, %v1710_v44  ;;  %v3002_v47 = vmax.f32 %v2987_v41, %v1711_v46  ;;  %v3024_v2 = vld [vmem:[#allocation4 + $0x8] sm:$0xff]  ;;  %v3032_v6 = vld [vmem:[#allocation4 + $0x10] sm:$0xff] }
 0x5fe   : > { %v3005_v52 = vmax.f32 %v2989_v42, %v1712_v49  ;;  %v3009_v53 = vmax.f32 %v2991_v43, %v2996_v50  ;;  %v1859_v61 = vld [vmem:[#allocation5] sm:$0x3]  ;;  %v3034_v7 = vld [vmem:[#allocation4 + $0x18] sm:$0xff]  ;;  %v3040_v8 = vmax.f32 %v3024_v2, %v1711_v46  ;;  %v3043_v14 = vmax.f32 %v3032_v6, %v1712_v49  ;;  %v1684_v31 = vld [vmem:[#allocation9] sm:$0x3] }
 0x5ff   : > { %v1687_v55 = vmul.f32 1.442695, %v1686_v45  ;;  %v1690_v54 = vmul.f32 1.442695, %v1689_v48  ;;  %v1722_v51 = vsub.f32 %v2985_v40, %v2999_v9  ;;  %v1723_v56 = vsub.f32 %v2987_v41, %v3002_v47  ;;  %v3022_v1 = vld [vmem:[#allocation4] sm:$0xff] }
 0x600   : > { %v1724_v57 = vsub.f32 %v2989_v42, %v3005_v52  ;;  %v1725_v58 = vsub.f32 %v2991_v43, %v3009_v53  ;;  %v1734_v59 = vsub.f32 %v1710_v44, %v2999_v9  ;;  %v1735_v60 = vsub.f32 %v1711_v46, %v3002_v47  ;;  %1860 = vst.msk [vmem:[%s3120_s9] sm:$0x3] %vm1393_vm8, %v1859_v61 }
 0x601   : > { %2317 = vpow2.f32 %v1687_v55  ;;  %v1726_v62 = vmul.f32 1.442695, %v1722_v51  ;;  %v1728_v63 = vmul.f32 1.442695, %v1723_v56  ;;  %v1736_v0 = vsub.f32 %v1712_v49, %v3005_v52 }
 0x602   : > { %2319 = vpow2.f32 %v1690_v54  ;;  %v1730_v3 = vmul.f32 1.442695, %v1724_v57  ;;  %v1732_v4 = vmul.f32 1.442695, %v1725_v58  ;;  %v1737_v5 = vsub.f32 %v2996_v50, %v3009_v53  ;;  %v1715_v54 = vld [vmem:[#allocation7 + $0x8] sm:$0xff]  ;;  %v1716_v57 = vld [vmem:[#allocation7 + $0x10] sm:$0xff] }
 0x603   : > { %2321 = vpow2.f32 %v1726_v62  ;;  %v1738_v10 = vmul.f32 1.442695, %v1734_v59  ;;  %v1740_v15 = vmul.f32 1.442695, %v1735_v60  ;;  %v3037_v16 = vmax.f32 %v3022_v1, %v1710_v44  ;;  %v1717_v60 = vld [vmem:[#allocation7 + $0x18] sm:$0xff] }
 0x604   : > { %2323 = vpow2.f32 %v1728_v63  ;;  %v1742_v11 = vmul.f32 1.442695, %v1736_v0  ;;  %v3047_v13 = vmax.f32 %v3034_v7, %v2996_v50  ;;  %v1744_v18 = vmul.f32 1.442695, %v1737_v5 }
 0x605   : > { %2325 = vpow2.f32 %v1730_v3  ;;  %v1792_v21 = vsub.f32 %v3022_v1, %v3037_v16  ;;  %v1793_v12 = vsub.f32 %v3024_v2, %v3040_v8  ;;  %v1794_v17 = vsub.f32 %v3032_v6, %v3043_v14 }
 0x606   : > { %2327 = vpow2.f32 %v1732_v4  ;;  %v1795_v20 = vsub.f32 %v3034_v7, %v3047_v13  ;;  %v1804_v22 = vsub.f32 %v1710_v44, %v3037_v16  ;;  %v1805_v25 = vsub.f32 %v1711_v46, %v3040_v8 }
 0x607   : > { %2329 = vpow2.f32 %v1738_v10  ;;  %v1796_v19 = vmul.f32 1.442695, %v1792_v21  ;;  %v1798_v23 = vmul.f32 1.442695, %v1793_v12  ;;  %v1800_v26 = vmul.f32 1.442695, %v1794_v17 }
 0x608   : > { %2331 = vpow2.f32 %v1740_v15  ;;  %v1806_v24 = vsub.f32 %v1712_v49, %v3043_v14  ;;  %v1802_v27 = vmul.f32 1.442695, %v1795_v20  ;;  %v1807_v28 = vsub.f32 %v2996_v50, %v3047_v13  ;;  %v1714_v50 = vld [vmem:[#allocation7] sm:$0xff] }
 0x609   : > { %2333 = vpow2.f32 %v1742_v11  ;;  %v1808_v29 = vmul.f32 1.442695, %v1804_v22  ;;  %v1810_v30 = vmul.f32 1.442695, %v1805_v25 }
 0x60a   : > { %2335 = vpow2.f32 %v1744_v18  ;;  %v1812_v32 = vmul.f32 1.442695, %v1806_v24  ;;  %v1814_v34 = vmul.f32 1.442695, %v1807_v28 }
 0x60b   : > { %2337 = vpow2.f32 %v1796_v19 }
 0x60c   : > { %2339 = vpow2.f32 %v1798_v23 }
 0x60d   : > { %2341 = vpow2.f32 %v1800_v26 }
 0x60e   : > { %v2318_v33 = vpop.eup %2317  ;;  %2343 = vpow2.f32 %v1802_v27 }
 0x60f   : > { %v2320_v35 = vpop.eup %2319  ;;  %2345 = vpow2.f32 %v1808_v29 }
 0x610   : > { %v2322_v36 = vpop.eup %2321  ;;  %v1692_v38 = vmul.f32 %v2320_v35, %v1684_v31  ;;  %2347 = vpow2.f32 %v1810_v30 }
 0x611   : > { %v2324_v44 = vpop.eup %2323  ;;  %2349 = vpow2.f32 %v1812_v32 }
 0x612   : > { %v2326_v46 = vpop.eup %2325  ;;  %v1693_v45 = vadd.f32 %v2318_v33, %v1692_v38  ;;  %2351 = vpow2.f32 %v1814_v34 }
 0x613   : > { %v2328_v48 = vpop.eup %2327 }
 0x614   : > { %v2330_v49 = vpop.eup %2329  ;;  %2353 = vlog2.f32 %v1693_v45 }
 0x615   : > { %v2332_v55 = vpop.eup %2331  ;;  %v1746_v51 = vmul.f32 %v2330_v49, %v1714_v50 }
 0x616   : > { %v2334_v56 = vpop.eup %2333  ;;  %v1747_v58 = vmul.f32 %v2332_v55, %v1715_v54 }
 0x617   : > { %v2336_v59 = vpop.eup %2335  ;;  %v1748_v61 = vmul.f32 %v2334_v56, %v1716_v57  ;;  %v1750_v62 = vadd.f32 %v2322_v36, %v1746_v51 }
 0x618   : > { %v2338_v63 = vpop.eup %2337  ;;  %v1749_v0 = vmul.f32 %v2336_v59, %v1717_v60  ;;  %v1751_v3 = vadd.f32 %v2324_v44, %v1747_v58 }
 0x619   : > { %v2340_v4 = vpop.eup %2339  ;;  %v1752_v5 = vadd.f32 %v2326_v46, %v1748_v61  ;;  %2355 = vlog2.f32 %v1750_v62 }
 0x61a   : > { %v2342_v10 = vpop.eup %2341  ;;  %v1753_v15 = vadd.f32 %v2328_v48, %v1749_v0  ;;  %2357 = vlog2.f32 %v1751_v3 }
 0x61b   : > { %v2344_v11 = vpop.eup %2343  ;;  %2359 = vlog2.f32 %v1752_v5 }
 0x61c   : > { %v2346_v18 = vpop.eup %2345  ;;  %2361 = vlog2.f32 %v1753_v15 }
 0x61d   : > { %v2348_v21 = vpop.eup %2347  ;;  %v1816_v12 = vmul.f32 %v2346_v18, %v1714_v50 }
 0x61e   : > { %v2350_v17 = vpop.eup %2349  ;;  %v1817_v20 = vmul.f32 %v2348_v21, %v1715_v54 }
 0x61f   : > { %v2352_v22 = vpop.eup %2351  ;;  %v1818_v19 = vmul.f32 %v2350_v17, %v1716_v57  ;;  %v1820_v23 = vadd.f32 %v2338_v63, %v1816_v12 }
 0x620   : > { %v1819_v25 = vmul.f32 %v2352_v22, %v1717_v60  ;;  %v1821_v26 = vadd.f32 %v2340_v4, %v1817_v20 }
 0x621   : > { %v2354_v24 = vpop.eup %2353  ;;  %v1822_v27 = vadd.f32 %v2342_v10, %v1818_v19  ;;  %2363 = vlog2.f32 %v1820_v23 }
 0x622   : > { %v1695_v28 = vmul.f32 0.6931472, %v2354_v24  ;;  %v1823_v29 = vadd.f32 %v2344_v11, %v1819_v25  ;;  %2365 = vlog2.f32 %v1821_v26 }
 0x623   : > { %2367 = vlog2.f32 %v1822_v27 }
 0x624   : > { %v1696_v30 = vadd.f32 %v1695_v28, %v2983_v39  ;;  %2369 = vlog2.f32 %v1823_v29 }
 0x626   : > { %v2356_v31 = vpop.eup %2355  ;;  %v1697_v35 = vsub.f32 %v1696_v30, %v2980_v37 }
 0x627   : > { %v2358_v32 = vpop.eup %2357  ;;  %v1755_v33 = vmul.f32 0.6931472, %v2356_v31 }
 0x628   : > { %v2360_v34 = vpop.eup %2359  ;;  %v1757_v36 = vmul.f32 0.6931472, %v2358_v32  ;;  %v1698_v39 = vsel %vm1393_vm8, %v1697_v35, 0.0 }
 0x629   : > { %v2362_v38 = vpop.eup %2361  ;;  %v1759_v44 = vmul.f32 0.6931472, %v2360_v34  ;;  %v1762_v46 = vadd.f32 %v1755_v33, %v2999_v9  ;;  %v1699_v58 = vrot.slane %v1698_v39, 4 }
 0x62a   : > { %v1761_v45 = vmul.f32 0.6931472, %v2362_v38  ;;  %v1763_v48 = vadd.f32 %v1757_v36, %v3002_v47 }
 0x62b   : > { %v1764_v49 = vadd.f32 %v1759_v44, %v3005_v52  ;;  %v1766_v50 = vsub.f32 %v1762_v46, %v2985_v40  ;;  %v1700_v3 = vadd.f32 %v1699_v58, %v1698_v39 }
 0x62c   : > { %v1765_v55 = vadd.f32 %v1761_v45, %v3009_v53  ;;  %v1767_v54 = vsub.f32 %v1763_v48, %v2987_v41 }
 0x62d   : > { %v1768_v37 = vsub.f32 %v1764_v49, %v2989_v42  ;;  %v1770_v51 = vsel %vm1669_vm7, %v1766_v50, 0.0 }
 0x62e   : > { %v2364_v56 = vpop.eup %2363  ;;  %v1769_v9 = vsub.f32 %v1765_v55, %v2991_v43  ;;  %v1771_v57 = vsel %vm1669_vm7, %v1767_v54, 0.0 }
 0x62f   : > { %v2366_v47 = vpop.eup %2365  ;;  %v1772_v52 = vadd.f32 %v1771_v57, %v1770_v51  ;;  %v1773_v40 = vsel %vm1669_vm7, %v1768_v37, 0.0  ;;  %v1825_v59 = vmul.f32 0.6931472, %v2364_v56 }
 0x630   : > { %v2368_v60 = vpop.eup %2367  ;;  %v1775_v53 = vsel %vm1669_vm7, %v1769_v9, 0.0  ;;  %v1827_v61 = vmul.f32 0.6931472, %v2366_v47 }
 0x631   : > { %v2370_v41 = vpop.eup %2369  ;;  %v1774_v62 = vadd.f32 %v1773_v40, %v1772_v52  ;;  %v1829_v42 = vmul.f32 0.6931472, %v2368_v60  ;;  %v1832_v63 = vadd.f32 %v1825_v59, %v3037_v16 }
 0x632   : > { %v1831_v0 = vmul.f32 0.6931472, %v2370_v41  ;;  %v1833_v43 = vadd.f32 %v1827_v61, %v3040_v8  ;;  %v1701_v8 = vrot.slane %v1700_v3, 2 }
 0x633   : > { %v1776_v4 = vadd.f32 %v1775_v53, %v1774_v62  ;;  %v1834_v5 = vadd.f32 %v1829_v42, %v3043_v14  ;;  %v1836_v10 = vsub.f32 %v1832_v63, %v3022_v1 }
 0x634   : > { %v1835_v15 = vadd.f32 %v1831_v0, %v3047_v13  ;;  %v1837_v11 = vsub.f32 %v1833_v43, %v3024_v2  ;;  %v1702_v23 = vadd.f32 %v1701_v8, %v1700_v3 }
 0x635   : > { %v1777_v18 = vrot.slane %v1776_v4, 4  ;;  %v1838_v21 = vsub.f32 %v1834_v5, %v3032_v6  ;;  %v1840_v12 = vsel %vm1669_vm7, %v1836_v10, 0.0 }
 0x636   : > { %v1839_v16 = vsub.f32 %v1835_v15, %v3034_v7  ;;  %v1841_v17 = vsel %vm1669_vm7, %v1837_v11, 0.0  ;;  %v1703_v6 = vrot.slane %v1702_v23, 1 }
 0x637   : > { %v1778_v20 = vadd.f32 %v1777_v18, %v1776_v4  ;;  %v1842_v22 = vadd.f32 %v1841_v17, %v1840_v12  ;;  %v1843_v14 = vsel %vm1669_vm7, %v1838_v21, 0.0 }
 0x638   : > { %v1845_v1 = vsel %vm1669_vm7, %v1839_v16, 0.0  ;;  %v1704_v7 = vadd.f32 %v1703_v6, %v1702_v23 }
 0x639   : > { %v1779_v19 = vrot.slane %v1778_v20, 2  ;;  %v1844_v13 = vadd.f32 %v1843_v14, %v1842_v22 }
 0x63a   : > { %v1705_v32 = vmul.f32 0.5, %v1704_v7 }
 0x63b   : > { %v1846_v2 = vadd.f32 %v1845_v1, %v1844_v13  ;;  %v1780_v25 = vadd.f32 %v1779_v19, %v1778_v20 }
 0x63d   : > { %v1847_v26 = vrot.slane %v1846_v2, 4  ;;  %v1781_v27 = vrot.slane %v1780_v25, 1 }
 0x63f   : > { %v1848_v24 = vadd.f32 %v1847_v26, %v1846_v2  ;;  %v1782_v30 = vadd.f32 %v1781_v27, %v1780_v25 }
 0x641   : > { %v1849_v28 = vrot.slane %v1848_v24, 2  ;;  %v1783_v34 = vmul.f32 0.03125, %v1782_v30 }
 0x643   : > { %v1850_v29 = vadd.f32 %v1849_v28, %v1848_v24 }
 0x645   : > { %v1851_v31 = vrot.slane %v1850_v29, 1 }
 0x647   : > { %v1852_v33 = vadd.f32 %v1851_v31, %v1850_v29 }
 0x649   : > { %v1853_v35 = vmul.f32 0.03125, %v1852_v33 }
 0x64b   : > { %v1854_v36 = vadd.f32 %v1853_v35, %v1705_v32 }
 0x64d   : > { %v1855_v38 = vadd.f32 %v1854_v36, %v1783_v34 }
 0x64f   : > { %v1856_v44 = vmul.f32 0.33333334, %v1855_v38 }
 0x651   : > { %1858 = vst.msk [vmem:[#allocation12] sm:$0x1] %vm1857_vm9, %v1856_v44 }
 0x652 PF: > { %p2183_p11 = scmp.eq.s32.totalorder %s2505_s20, 1  ;;  %s2428_s16 = smov [#allocation12]  }
 0x653   : > { %s1880_s27 = sshll.u32 %s2428_s16, 4  ;;  %s1881_s27 = int_to_ptr.vmem [resolvable:$true] %s1880_s27 }
 0x654   : > { %s2371_s28 = scalar_lea.vmem %s1881_s27, 16  ;;  %s2377_s29 = scalar_lea.vmem %s1881_s27, 32 }
 0x655   : > { %p2372_p12 = scmp.ne.s32.totalorder %s1881_s27, %s2371_s28  ;;  %p2378_p1 = scmp.lt.s32.totalorder %s1881_s27, %s1881_s27 }
 0x656   : > { %p2379_p2 = scmp.lt.s32.totalorder %s2377_s29, %s2371_s28 }
 0x657   : > { %p2373_p13 = pnand %p2372_p12, %p2183_p11 }
 0x658   : > { %p2380_p3 = por %p2379_p2, %p2378_p1 }
 0x659   : > { %p2374_p0 = pneg %p2373_p13 }
 0x65b   : > { %p2381_p4 = pnand %p2380_p3, %p2374_p0 }
 0x65d   : > { %2384 = shalt.err (!%p2381_p4)
}
 0x65e   : > { %2180 = dma.vmem_to_hbm [thread:$0]  (%p2183_p11), %s1881_s27, 16, %s3122_s11, [#allocation13]  }
 0x65f   : > { %2408 = dma.done.wait (%p2183_p11), [#allocation13], 16  }
 0x660   : > { %2410 = vsyncadd (%p2183_p11), [#allocation13], 4294967280 }
 0x661 PF: > { %p20_p5 = scmp.ge.s32.totalorder %s2508_s21, 4   ;;  %s3124_s17 = smov %s2417_s18 }
 0x662   : > { %s3125_s18 = smov %s2517_s24  ;;  %s3126_s19 = smov %s2508_s21 }
 0x663   :  { %22 = sbr.rel (!%p20_p5) target bundleno = 2 (0x2), region = 205 }
 0x668   :  { %1904 = vsyncpa [#allocation13], 1 }
 0x669   :  { %1906 = vsyncpa [#allocation13 + $0x1], 1 }

</bundles_post_ra>
